<compile_context>
chip_gen: v6e
topology: v6e:2x2x1
jax: 0.10.0
libtpu: 0.0.40
codegen_flags: <defaults>
</compile_context>

<pallas_src>
import functools

import jax
import jax.numpy as jnp
from jax.experimental import pallas as pl
from jax.experimental.pallas import tpu as pltpu


def _make_divisible(v, divisor, min_value=None):
    if min_value is None:
        min_value = divisor
    new_v = max(min_value, int(v + divisor / 2) // divisor * divisor)
    if new_v < 0.9 * v:
        new_v += divisor
    return new_v


def _hardsigmoid(x):
    # torch.nn.Hardsigmoid: relu6(x + 3) / 6
    return jnp.clip(x / 6.0 + 0.5, 0.0, 1.0)


def _hardswish(x):
    # torch.nn.Hardswish: x * relu6(x + 3) / 6
    return x * _hardsigmoid(x)


def _inverted_residual_kernel(
    x_ref,        # (BB, Cin, HW)     channel-major, spatial on lanes
    w_exp_ref,    # (Cexp, Cin)       BN1 scale pre-folded
    w_dwm_ref,    # (K*K, Cexp, HW)   BN2 scale AND SAME-padding mask pre-folded per tap
    w_se_ref,     # (2, Cexp, Csq)    [w_se1, w_se2^T]
    w_proj_ref,   # (Cout, Cexp)      BN3 scale pre-folded
    bias_ref,     # (4, Cexp, 1)      [bn1_b, bn2_b, bn3_b(first Cout rows), b_se2]
    bse1_ref,     # (1, Csq)
    out_ref,      # (BB, Cout, HW)
    *, K, H, W, use_res, batch_block,
):
    HW = H * W
    pad = (K - 1) // 2
    cout = w_proj_ref.shape[0]

    # Hoist the small constants out of the per-image loop.
    w_exp = w_exp_ref[...]
    w_proj = w_proj_ref[...]
    b_exp = bias_ref[0]
    b_dw = bias_ref[1]
    b_proj = bias_ref[2][:cout]
    b_se2 = bias_ref[3]
    w_se1 = w_se_ref[0]
    w_se2t = w_se_ref[1]
    b_se1 = bse1_ref[...]

    # The whole batch block is processed inside one grid step (overhead-bound regime):
    # the per-image work below is traced `batch_block` times.
    for b in range(batch_block):
        x = x_ref[b].astype(jnp.float32)                                # (Cin, HW)

        # ---- 1x1 expand (BN scale folded into the weights) + bias + Hardswish ----
        xe = jnp.dot(w_exp, x, preferred_element_type=jnp.float32)      # (Cexp, HW)
        xe = _hardswish(xe + b_exp)

        # ---- KxK depthwise, stride 1, SAME padding ----
        # Each tap is a lane rotation of the flat (h*W + w) axis (XLU slot); the SAME
        # padding validity is already baked into w_dwm_ref (zeros on invalid lanes), so
        # every tap costs exactly one roll + one multiply.
        terms = []
        for kh in range(K):
            for kw in range(K):
                t = kh * K + kw
                d = (kh - pad) * W + (kw - pad)                         # flat source offset
                if d == 0:
                    tap = xe
                else:
                    tap = pltpu.roll(xe, shift=(-d) % HW, axis=1)       # tap[p] = xe[p + d]
                terms.append(tap * w_dwm_ref[t])
        # Pairwise-tree accumulation (shorter add dependence chain than a serial chain).
        while len(terms) > 1:
            nxt = [terms[i] + terms[i + 1] for i in range(0, len(terms) - 1, 2)]
            if len(terms) % 2:
                nxt.append(terms[-1])
            terms = nxt
        xd = _hardswish(terms[0] + b_dw)                                # (Cexp, HW)

        # ---- Squeeze-Excitation (VPU/XLU only: broadcast-mul + reductions, no MXU) ----
        pooled = jnp.mean(xd, axis=1, keepdims=True)                    # (Cexp, 1)
        s1 = jnp.sum(w_se1 * pooled, axis=0, keepdims=True) + b_se1     # (1, Csq)
        s1 = jnp.maximum(s1, 0.0)                                       # ReLU
        s2 = jnp.sum(w_se2t * s1, axis=1, keepdims=True) + b_se2        # (Cexp, 1)
        xs = xd * _hardsigmoid(s2)                                      # per-channel rescale

        # ---- 1x1 project (BN scale folded) + bias, no activation ----
        xo = jnp.dot(w_proj, xs, preferred_element_type=jnp.float32)    # (Cout, HW)
        xo = xo + b_proj

        # ---- residual ----
        if use_res:
            xo = xo + x

        out_ref[b] = xo.astype(out_ref.dtype)                           # lane-dense store


def prepare_kernel_params(p, *, K, H, W):
    """Host-side, one-time parameter prep: fold BN scales into the conv weights,
    transpose to channel-major orientation, pack the small per-channel vectors, and
    pre-multiply the depthwise SAME-padding border masks into the depthwise weights."""
    cin, cexp = p["w_exp"].shape
    csq = p["w_se1"].shape[1]
    cout = p["w_proj"].shape[1]
    f32 = jnp.float32
    assert cout <= cexp and csq <= cexp

    w_exp_t = (p["w_exp"] * p["bn1_s"]).T.astype(f32)                   # (Cexp, Cin)
    w_proj_t = (p["w_proj"] * p["bn3_s"]).T.astype(f32)                 # (Cout, Cexp)

    # Depthwise weights with BN2 scale folded in: (K*K, Cexp)
    w_dw = (p["w_dw"].reshape(K * K, cexp) * p["bn2_s"]).astype(f32)

    # {0,1} validity masks for the K*K taps on the flat h*W + w axis (SAME padding).
    pad = (K - 1) // 2
    hh, ww = jnp.meshgrid(jnp.arange(H), jnp.arange(W), indexing="ij")
    rows = []
    for kh in range(K):
        for kw in range(K):
            dh, dw = kh - pad, kw - pad
            ok = ((hh + dh >= 0) & (hh + dh < H) & (ww + dw >= 0) & (ww + dw < W))
            rows.append(ok.reshape(H * W))
    tap_mask = jnp.stack(rows).astype(f32)                              # (K*K, HW)

    # Fused masked-weight table: one multiply per tap in-kernel, literal zeros outside
    # the image (no 0*Inf hazard), no in-loop broadcasts.
    w_dwm = w_dw[:, :, None] * tap_mask[:, None, :]                     # (K*K, Cexp, HW)

    w_se_p = jnp.stack([p["w_se1"], p["w_se2"].T]).astype(f32)          # (2, Cexp, Csq)

    bias_p = jnp.zeros((4, cexp, 1), f32)
    bias_p = bias_p.at[0, :, 0].set(p["bn1_b"][0])
    bias_p = bias_p.at[1, :, 0].set(p["bn2_b"][0])
    bias_p = bias_p.at[2, :cout, 0].set(p["bn3_b"][0])
    bias_p = bias_p.at[3, :, 0].set(p["b_se2"][0])

    b_se1 = p["b_se1"].astype(f32)                                      # (1, Csq)

    return dict(w_exp_t=w_exp_t, w_dwm=w_dwm, w_se_p=w_se_p,
                w_proj_t=w_proj_t, bias_p=bias_p, b_se1=b_se1)


def inverted_residual(x_nchw, kp, *, K, use_res=True, batch_block=None):
    """Wrapper: accepts NCHW (PyTorch convention), returns NCHW. Only reshapes."""
    N, Cin, H, W = x_nchw.shape
    HW = H * W
    Cexp = kp["w_exp_t"].shape[0]
    Csq = kp["w_se_p"].shape[2]
    Cout = kp["w_proj_t"].shape[0]

    # Default: fold the whole batch into a single grid step (the kernel is
    # overhead-bound at these shapes).  batch_block < N keeps a batch grid axis
    # (e.g. for v7x core sharding or very large N).
    if batch_block is None:
        batch_block = N
    assert N % batch_block == 0, "batch must be divisible by batch_block"
    n_steps = N // batch_block

    x = x_nchw.reshape(N, Cin, HW)                                      # channel-major, free

    def const_spec(shape):
        nd = len(shape)
        return pl.BlockSpec(shape, lambda n, _nd=nd: (0,) * _nd)

    kernel = functools.partial(
        _inverted_residual_kernel, K=K, H=H, W=W, use_res=use_res,
        batch_block=batch_block)

    # Advisory cost estimate so XLA can schedule/overlap this small custom call.
    flops = 2 * N * HW * (Cexp * Cin + K * K * Cexp + Cexp * Cout)
    bytes_accessed = 4 * (N * Cin * HW + N * Cout * HW
                          + Cexp * Cin + K * K * Cexp * HW
                          + 2 * Cexp * Csq + Cout * Cexp + 4 * Cexp + Csq)
    cost = pl.CostEstimate(flops=flops, transcendentals=0,
                           bytes_accessed=bytes_accessed)

    out = pl.pallas_call(
        kernel,
        out_shape=jax.ShapeDtypeStruct((N, Cout, HW), x_nchw.dtype),
        grid_spec=pltpu.PrefetchScalarGridSpec(
            num_scalar_prefetch=0,
            grid=(n_steps,),                                            # batch blocks
            in_specs=[
                pl.BlockSpec((batch_block, Cin, HW), lambda n: (n, 0, 0)),
                const_spec((Cexp, Cin)),
                const_spec((K * K, Cexp, HW)),
                const_spec((2, Cexp, Csq)),
                const_spec((Cout, Cexp)),
                const_spec((4, Cexp, 1)),
                const_spec((1, Csq)),
            ],
            out_specs=pl.BlockSpec((batch_block, Cout, HW), lambda n: (n, 0, 0)),
        ),
        # Batch blocks are independent.  (On v7x, use batch_block=N//2 so both
        # TensorCores get work; see TODO at the top.)
        compiler_params=pltpu.CompilerParams(
            dimension_semantics=("parallel",)),
        cost_estimate=cost,
    )(x, kp["w_exp_t"], kp["w_dwm"], kp["w_se_p"],
      kp["w_proj_t"], kp["bias_p"], kp["b_se1"])

    return out.reshape(N, Cout, H, W)                                   # -> NCHW, free


def init_params(key, cin, cexp, csq, cout, K):
    """Deterministic synthetic parameters (BatchNorm pre-folded to scale/bias)."""
    ks = jax.random.split(key, 10)
    f32 = jnp.float32
    p = {
        "w_exp": 0.2 * jax.random.normal(ks[0], (cin, cexp), f32),
        "w_dw": 0.2 * jax.random.normal(ks[1], (K * K, 1, cexp), f32),
        "w_proj": 0.2 * jax.random.normal(ks[2], (cexp, cout), f32),
        "w_se1": 0.2 * jax.random.normal(ks[3], (cexp, csq), f32),
        "b_se1": 0.1 * jax.random.normal(ks[4], (1, csq), f32),
        "w_se2": 0.2 * jax.random.normal(ks[5], (csq, cexp), f32),
        "b_se2": 0.1 * jax.random.normal(ks[6], (1, cexp), f32),
    }

    def folded_bn(k, c):
        k1, k2, k3, k4 = jax.random.split(k, 4)
        gamma = 1.0 + 0.1 * jax.random.normal(k1, (1, c), f32)
        beta = 0.1 * jax.random.normal(k2, (1, c), f32)
        mean = 0.1 * jax.random.normal(k3, (1, c), f32)
        var = jnp.abs(1.0 + 0.1 * jax.random.normal(k4, (1, c), f32))
        eps = 1e-3  # MobileNetV3 uses BatchNorm2d(eps=0.001)
        scale = gamma * jax.lax.rsqrt(var + eps)
        return scale, beta - mean * scale

    p["bn1_s"], p["bn1_b"] = folded_bn(ks[7], cexp)
    p["bn2_s"], p["bn2_b"] = folded_bn(ks[8], cexp)
    p["bn3_s"], p["bn3_b"] = folded_bn(ks[9], cout)
    return p


def ref_forward(x_nchw, p, *, K):
    """Pure-JAX (XLA) reference of the same forward pass, for verification."""
    hi = jax.lax.Precision.HIGHEST
    x = jnp.transpose(x_nchw, (0, 2, 3, 1))                             # NHWC
    cin, cexp = p["w_exp"].shape
    cout = p["w_proj"].shape[1]
    dn = ("NHWC", "HWIO", "NHWC")

    y = jax.lax.conv_general_dilated(
        x, p["w_exp"].reshape(1, 1, cin, cexp), (1, 1), "VALID",
        dimension_numbers=dn, precision=hi)
    y = _hardswish(y * p["bn1_s"] + p["bn1_b"])

    w_dw = p["w_dw"].reshape(K, K, 1, cexp)                             # HWIO, grouped
    y = jax.lax.conv_general_dilated(
        y, w_dw, (1, 1), "SAME", dimension_numbers=dn,
        feature_group_count=cexp, precision=hi)
    y = _hardswish(y * p["bn2_s"] + p["bn2_b"])

    s = jnp.mean(y, axis=(1, 2), keepdims=True)                         # (N,1,1,Cexp)
    s = jnp.maximum(
        jnp.einsum("nijc,cd->nijd", s, p["w_se1"], precision=hi) + p["b_se1"], 0.0)
    s = _hardsigmoid(
        jnp.einsum("nijc,cd->nijd", s, p["w_se2"], precision=hi) + p["b_se2"])
    y = y * s

    y = jax.lax.conv_general_dilated(
        y, p["w_proj"].reshape(1, 1, cexp, cout), (1, 1), "VALID",
        dimension_numbers=dn, precision=hi)
    y = y * p["bn3_s"] + p["bn3_b"]
    y = y + x                                                           # residual
    return jnp.transpose(y, (0, 3, 1, 2))                               # NCHW


if __name__ == "__main__":
    # InvertedResidualConfig(16, 3, 32, 16, use_se=True, activation='HS',
    #                        stride=1, dilation=1, width_mult=1.0)
    width_mult = 1.0
    K = 3
    cin = _make_divisible(16 * width_mult, 8)    # 16
    cexp = _make_divisible(32 * width_mult, 8)   # 32
    cout = _make_divisible(16 * width_mult, 8)   # 16
    csq = _make_divisible(cexp // 4, 8)          # 8
    N, H, W = 2, 16, 16

    key = jax.random.PRNGKey(0)
    kx, kp_key = jax.random.split(key)
    x_nchw = jax.random.normal(kx, (N, cin, H, W), jnp.float32)
    params = init_params(kp_key, cin, cexp, csq, cout, K)
    kparams = prepare_kernel_params(params, K=K, H=H, W=W)

    out = inverted_residual(x_nchw, kparams, K=K, use_res=True)
    out = jax.block_until_ready(out)
    assert out.shape == (N, cout, H, W)

    ref = jax.block_until_ready(ref_forward(x_nchw, params, K=K))
    max_err = float(jnp.max(jnp.abs(out - ref)))
    if max_err > 1e-3:
        raise AssertionError(f"Pallas kernel mismatch vs reference: max_err={max_err}")

    print("KERNEL_OK")
</pallas_src>

<mosaic_0001>
module attributes {stable_mosaic.version = 11 : i64} {
  func.func @_inverted_residual_kernel(%arg0: i32, %arg1: memref<2x16x256xf32, #tpu.memory_space<vmem>>, %arg2: memref<32x16xf32, #tpu.memory_space<vmem>>, %arg3: memref<9x32x256xf32, #tpu.memory_space<vmem>>, %arg4: memref<2x32x8xf32, #tpu.memory_space<vmem>>, %arg5: memref<16x32xf32, #tpu.memory_space<vmem>>, %arg6: memref<4x32x1xf32, #tpu.memory_space<vmem>>, %arg7: memref<1x8xf32, #tpu.memory_space<vmem>>, %arg8: memref<2x16x256xf32, #tpu.memory_space<vmem>>) attributes {dimension_semantics = [#tpu.dimension_semantics<parallel>], iteration_bounds = array<i64: 1>, scalar_prefetch = 0 : i64, scratch_operands = 0 : i64, tpu.core_type = #tpu.core_type<tc>, window_params = [{transform_indices = @transform_0, window_bounds = array<i64: 2, 16, 256>}, {pipeline_mode = #tpu.pipeline_mode<synchronous>, transform_indices = @transform_1, window_bounds = array<i64: 32, 16>}, {pipeline_mode = #tpu.pipeline_mode<synchronous>, transform_indices = @transform_2, window_bounds = array<i64: 9, 32, 256>}, {pipeline_mode = #tpu.pipeline_mode<synchronous>, transform_indices = @transform_3, window_bounds = array<i64: 2, 32, 8>}, {pipeline_mode = #tpu.pipeline_mode<synchronous>, transform_indices = @transform_4, window_bounds = array<i64: 16, 32>}, {pipeline_mode = #tpu.pipeline_mode<synchronous>, transform_indices = @transform_5, window_bounds = array<i64: 4, 32, 1>}, {pipeline_mode = #tpu.pipeline_mode<synchronous>, transform_indices = @transform_6, window_bounds = array<i64: 1, 8>}, {transform_indices = @transform_7, window_bounds = array<i64: 2, 16, 256>}]} {
    %c0 = arith.constant 0 : index
    %c0_0 = arith.constant 0 : index
    %0 = vector.load %arg2[%c0, %c0_0] : memref<32x16xf32, #tpu.memory_space<vmem>>, vector<32x16xf32>
    %c0_1 = arith.constant 0 : index
    %c0_2 = arith.constant 0 : index
    %1 = vector.load %arg5[%c0_1, %c0_2] : memref<16x32xf32, #tpu.memory_space<vmem>>, vector<16x32xf32>
    %c0_3 = arith.constant 0 : index
    %c0_4 = arith.constant 0 : index
    %c0_5 = arith.constant 0 : index
    %2 = vector.load %arg6[%c0_3, %c0_4, %c0_5] : memref<4x32x1xf32, #tpu.memory_space<vmem>>, vector<1x32x1xf32>
    %3 = vector.shape_cast %2 : vector<1x32x1xf32> to vector<32x1xf32>
    %c1 = arith.constant 1 : index
    %c0_6 = arith.constant 0 : index
    %c0_7 = arith.constant 0 : index
    %4 = vector.load %arg6[%c1, %c0_6, %c0_7] : memref<4x32x1xf32, #tpu.memory_space<vmem>>, vector<1x32x1xf32>
    %5 = vector.shape_cast %4 : vector<1x32x1xf32> to vector<32x1xf32>
    %c2 = arith.constant 2 : index
    %c0_8 = arith.constant 0 : index
    %c0_9 = arith.constant 0 : index
    %6 = vector.load %arg6[%c2, %c0_8, %c0_9] : memref<4x32x1xf32, #tpu.memory_space<vmem>>, vector<1x32x1xf32>
    %7 = vector.shape_cast %6 : vector<1x32x1xf32> to vector<32x1xf32>
    %8 = vector.extract_strided_slice %7 {offsets = [0, 0], sizes = [16, 1], strides = [1, 1]} : vector<32x1xf32> to vector<16x1xf32>
    %c3 = arith.constant 3 : index
    %c0_10 = arith.constant 0 : index
    %c0_11 = arith.constant 0 : index
    %9 = vector.load %arg6[%c3, %c0_10, %c0_11] : memref<4x32x1xf32, #tpu.memory_space<vmem>>, vector<1x32x1xf32>
    %10 = vector.shape_cast %9 : vector<1x32x1xf32> to vector<32x1xf32>
    %c0_12 = arith.constant 0 : index
    %c0_13 = arith.constant 0 : index
    %c0_14 = arith.constant 0 : index
    %11 = vector.load %arg4[%c0_12, %c0_13, %c0_14] : memref<2x32x8xf32, #tpu.memory_space<vmem>>, vector<1x32x8xf32>
    %12 = vector.shape_cast %11 : vector<1x32x8xf32> to vector<32x8xf32>
    %c1_15 = arith.constant 1 : index
    %c0_16 = arith.constant 0 : index
    %c0_17 = arith.constant 0 : index
    %13 = vector.load %arg4[%c1_15, %c0_16, %c0_17] : memref<2x32x8xf32, #tpu.memory_space<vmem>>, vector<1x32x8xf32>
    %14 = vector.shape_cast %13 : vector<1x32x8xf32> to vector<32x8xf32>
    %c0_18 = arith.constant 0 : index
    %c0_19 = arith.constant 0 : index
    %15 = vector.load %arg7[%c0_18, %c0_19] : memref<1x8xf32, #tpu.memory_space<vmem>>, vector<1x8xf32>
    %c0_20 = arith.constant 0 : index
    %c0_21 = arith.constant 0 : index
    %c0_22 = arith.constant 0 : index
    %16 = vector.load %arg1[%c0_20, %c0_21, %c0_22] : memref<2x16x256xf32, #tpu.memory_space<vmem>>, vector<1x16x256xf32>
    %17 = vector.shape_cast %16 : vector<1x16x256xf32> to vector<16x256xf32>
    %cst = arith.constant dense<0.000000e+00> : vector<32x256xf32>
    %18 = tpu.matmul %0, %17, %cst {dimension_numbers = #tpu.dot_dimension_numbers<[1], [0], [0], [1], [0, 0, 1, 1], [], []>} : vector<32x16xf32>, vector<16x256xf32>, vector<32x256xf32> -> vector<32x256xf32>
    %19 = vector.broadcast %3 : vector<32x1xf32> to vector<32x256xf32>
    %20 = arith.addf %18, %19 : vector<32x256xf32>
    %cst_23 = arith.constant 6.000000e+00 : f32
    %21 = vector.broadcast %cst_23 : f32 to vector<32x256xf32>
    %22 = arith.divf %20, %21 : vector<32x256xf32>
    %cst_24 = arith.constant 5.000000e-01 : f32
    %23 = vector.broadcast %cst_24 : f32 to vector<32x256xf32>
    %24 = arith.addf %22, %23 : vector<32x256xf32>
    %cst_25 = arith.constant 0.000000e+00 : f32
    %cst_26 = arith.constant 1.000000e+00 : f32
    %25 = vector.broadcast %cst_25 : f32 to vector<32x256xf32>
    %26 = arith.maximumf %25, %24 : vector<32x256xf32>
    %27 = vector.broadcast %cst_26 : f32 to vector<32x256xf32>
    %28 = arith.minimumf %27, %26 : vector<32x256xf32>
    %29 = arith.mulf %20, %28 : vector<32x256xf32>
    %c17_i32 = arith.constant 17 : i32
    %30 = tpu.dynamic_rotate %29 by %c17_i32 dim 1 : vector<32x256xf32>, i32 -> vector<32x256xf32>
    %c0_27 = arith.constant 0 : index
    %c0_28 = arith.constant 0 : index
    %c0_29 = arith.constant 0 : index
    %31 = vector.load %arg3[%c0_27, %c0_28, %c0_29] : memref<9x32x256xf32, #tpu.memory_space<vmem>>, vector<1x32x256xf32>
    %32 = vector.shape_cast %31 : vector<1x32x256xf32> to vector<32x256xf32>
    %33 = arith.mulf %30, %32 : vector<32x256xf32>
    %c16_i32 = arith.constant 16 : i32
    %34 = tpu.dynamic_rotate %29 by %c16_i32 dim 1 : vector<32x256xf32>, i32 -> vector<32x256xf32>
    %c1_30 = arith.constant 1 : index
    %c0_31 = arith.constant 0 : index
    %c0_32 = arith.constant 0 : index
    %35 = vector.load %arg3[%c1_30, %c0_31, %c0_32] : memref<9x32x256xf32, #tpu.memory_space<vmem>>, vector<1x32x256xf32>
    %36 = vector.shape_cast %35 : vector<1x32x256xf32> to vector<32x256xf32>
    %37 = arith.mulf %34, %36 : vector<32x256xf32>
    %c15_i32 = arith.constant 15 : i32
    %38 = tpu.dynamic_rotate %29 by %c15_i32 dim 1 : vector<32x256xf32>, i32 -> vector<32x256xf32>
    %c2_33 = arith.constant 2 : index
    %c0_34 = arith.constant 0 : index
    %c0_35 = arith.constant 0 : index
    %39 = vector.load %arg3[%c2_33, %c0_34, %c0_35] : memref<9x32x256xf32, #tpu.memory_space<vmem>>, vector<1x32x256xf32>
    %40 = vector.shape_cast %39 : vector<1x32x256xf32> to vector<32x256xf32>
    %41 = arith.mulf %38, %40 : vector<32x256xf32>
    %c1_i32 = arith.constant 1 : i32
    %42 = tpu.dynamic_rotate %29 by %c1_i32 dim 1 : vector<32x256xf32>, i32 -> vector<32x256xf32>
    %c3_36 = arith.constant 3 : index
    %c0_37 = arith.constant 0 : index
    %c0_38 = arith.constant 0 : index
    %43 = vector.load %arg3[%c3_36, %c0_37, %c0_38] : memref<9x32x256xf32, #tpu.memory_space<vmem>>, vector<1x32x256xf32>
    %44 = vector.shape_cast %43 : vector<1x32x256xf32> to vector<32x256xf32>
    %45 = arith.mulf %42, %44 : vector<32x256xf32>
    %c4 = arith.constant 4 : index
    %c0_39 = arith.constant 0 : index
    %c0_40 = arith.constant 0 : index
    %46 = vector.load %arg3[%c4, %c0_39, %c0_40] : memref<9x32x256xf32, #tpu.memory_space<vmem>>, vector<1x32x256xf32>
    %47 = vector.shape_cast %46 : vector<1x32x256xf32> to vector<32x256xf32>
    %48 = arith.mulf %29, %47 : vector<32x256xf32>
    %c255_i32 = arith.constant 255 : i32
    %49 = tpu.dynamic_rotate %29 by %c255_i32 dim 1 : vector<32x256xf32>, i32 -> vector<32x256xf32>
    %c5 = arith.constant 5 : index
    %c0_41 = arith.constant 0 : index
    %c0_42 = arith.constant 0 : index
    %50 = vector.load %arg3[%c5, %c0_41, %c0_42] : memref<9x32x256xf32, #tpu.memory_space<vmem>>, vector<1x32x256xf32>
    %51 = vector.shape_cast %50 : vector<1x32x256xf32> to vector<32x256xf32>
    %52 = arith.mulf %49, %51 : vector<32x256xf32>
    %c241_i32 = arith.constant 241 : i32
    %53 = tpu.dynamic_rotate %29 by %c241_i32 dim 1 : vector<32x256xf32>, i32 -> vector<32x256xf32>
    %c6 = arith.constant 6 : index
    %c0_43 = arith.constant 0 : index
    %c0_44 = arith.constant 0 : index
    %54 = vector.load %arg3[%c6, %c0_43, %c0_44] : memref<9x32x256xf32, #tpu.memory_space<vmem>>, vector<1x32x256xf32>
    %55 = vector.shape_cast %54 : vector<1x32x256xf32> to vector<32x256xf32>
    %56 = arith.mulf %53, %55 : vector<32x256xf32>
    %c240_i32 = arith.constant 240 : i32
    %57 = tpu.dynamic_rotate %29 by %c240_i32 dim 1 : vector<32x256xf32>, i32 -> vector<32x256xf32>
    %c7 = arith.constant 7 : index
    %c0_45 = arith.constant 0 : index
    %c0_46 = arith.constant 0 : index
    %58 = vector.load %arg3[%c7, %c0_45, %c0_46] : memref<9x32x256xf32, #tpu.memory_space<vmem>>, vector<1x32x256xf32>
    %59 = vector.shape_cast %58 : vector<1x32x256xf32> to vector<32x256xf32>
    %60 = arith.mulf %57, %59 : vector<32x256xf32>
    %c239_i32 = arith.constant 239 : i32
    %61 = tpu.dynamic_rotate %29 by %c239_i32 dim 1 : vector<32x256xf32>, i32 -> vector<32x256xf32>
    %c8 = arith.constant 8 : index
    %c0_47 = arith.constant 0 : index
    %c0_48 = arith.constant 0 : index
    %62 = vector.load %arg3[%c8, %c0_47, %c0_48] : memref<9x32x256xf32, #tpu.memory_space<vmem>>, vector<1x32x256xf32>
    %63 = vector.shape_cast %62 : vector<1x32x256xf32> to vector<32x256xf32>
    %64 = arith.mulf %61, %63 : vector<32x256xf32>
    %65 = arith.addf %33, %37 : vector<32x256xf32>
    %66 = arith.addf %41, %45 : vector<32x256xf32>
    %67 = arith.addf %48, %52 : vector<32x256xf32>
    %68 = arith.addf %56, %60 : vector<32x256xf32>
    %69 = arith.addf %65, %66 : vector<32x256xf32>
    %70 = arith.addf %67, %68 : vector<32x256xf32>
    %71 = arith.addf %69, %70 : vector<32x256xf32>
    %72 = arith.addf %71, %64 : vector<32x256xf32>
    %73 = vector.broadcast %5 : vector<32x1xf32> to vector<32x256xf32>
    %74 = arith.addf %72, %73 : vector<32x256xf32>
    %cst_49 = arith.constant 6.000000e+00 : f32
    %75 = vector.broadcast %cst_49 : f32 to vector<32x256xf32>
    %76 = arith.divf %74, %75 : vector<32x256xf32>
    %cst_50 = arith.constant 5.000000e-01 : f32
    %77 = vector.broadcast %cst_50 : f32 to vector<32x256xf32>
    %78 = arith.addf %76, %77 : vector<32x256xf32>
    %cst_51 = arith.constant 0.000000e+00 : f32
    %cst_52 = arith.constant 1.000000e+00 : f32
    %79 = vector.broadcast %cst_51 : f32 to vector<32x256xf32>
    %80 = arith.maximumf %79, %78 : vector<32x256xf32>
    %81 = vector.broadcast %cst_52 : f32 to vector<32x256xf32>
    %82 = arith.minimumf %81, %80 : vector<32x256xf32>
    %83 = arith.mulf %74, %82 : vector<32x256xf32>
    %cst_53 = arith.constant dense<0.000000e+00> : vector<32xf32>
    %84 = vector.multi_reduction <add>, %83, %cst_53 [1] : vector<32x256xf32> to vector<32xf32>
    %85 = vector.shape_cast %84 : vector<32xf32> to vector<32x1xf32>
    %cst_54 = arith.constant 2.560000e+02 : f32
    %86 = vector.broadcast %cst_54 : f32 to vector<32x1xf32>
    %87 = arith.divf %85, %86 : vector<32x1xf32>
    %88 = vector.broadcast %87 : vector<32x1xf32> to vector<32x8xf32>
    %89 = arith.mulf %12, %88 : vector<32x8xf32>
    %cst_55 = arith.constant dense<0.000000e+00> : vector<8xf32>
    %90 = vector.multi_reduction <add>, %89, %cst_55 [0] : vector<32x8xf32> to vector<8xf32>
    %91 = vector.shape_cast %90 : vector<8xf32> to vector<1x8xf32>
    %92 = arith.addf %91, %15 : vector<1x8xf32>
    %cst_56 = arith.constant 0.000000e+00 : f32
    %93 = vector.broadcast %cst_56 : f32 to vector<1x8xf32>
    %94 = arith.maximumf %92, %93 : vector<1x8xf32>
    %95 = vector.broadcast %94 : vector<1x8xf32> to vector<32x8xf32>
    %96 = arith.mulf %14, %95 : vector<32x8xf32>
    %cst_57 = arith.constant dense<0.000000e+00> : vector<32xf32>
    %97 = vector.multi_reduction <add>, %96, %cst_57 [1] : vector<32x8xf32> to vector<32xf32>
    %98 = vector.shape_cast %97 : vector<32xf32> to vector<32x1xf32>
    %99 = arith.addf %98, %10 : vector<32x1xf32>
    %cst_58 = arith.constant 6.000000e+00 : f32
    %100 = vector.broadcast %cst_58 : f32 to vector<32x1xf32>
    %101 = arith.divf %99, %100 : vector<32x1xf32>
    %cst_59 = arith.constant 5.000000e-01 : f32
    %102 = vector.broadcast %cst_59 : f32 to vector<32x1xf32>
    %103 = arith.addf %101, %102 : vector<32x1xf32>
    %cst_60 = arith.constant 0.000000e+00 : f32
    %cst_61 = arith.constant 1.000000e+00 : f32
    %104 = vector.broadcast %cst_60 : f32 to vector<32x1xf32>
    %105 = arith.maximumf %104, %103 : vector<32x1xf32>
    %106 = vector.broadcast %cst_61 : f32 to vector<32x1xf32>
    %107 = arith.minimumf %106, %105 : vector<32x1xf32>
    %108 = vector.broadcast %107 : vector<32x1xf32> to vector<32x256xf32>
    %109 = arith.mulf %83, %108 : vector<32x256xf32>
    %cst_62 = arith.constant dense<0.000000e+00> : vector<16x256xf32>
    %110 = tpu.matmul %1, %109, %cst_62 {dimension_numbers = #tpu.dot_dimension_numbers<[1], [0], [0], [1], [0, 0, 1, 1], [], []>} : vector<16x32xf32>, vector<32x256xf32>, vector<16x256xf32> -> vector<16x256xf32>
    %111 = vector.broadcast %8 : vector<16x1xf32> to vector<16x256xf32>
    %112 = arith.addf %110, %111 : vector<16x256xf32>
    %113 = arith.addf %112, %17 : vector<16x256xf32>
    %c0_63 = arith.constant 0 : index
    %c0_64 = arith.constant 0 : index
    %c0_65 = arith.constant 0 : index
    %114 = vector.load %arg8[%c0_63, %c0_64, %c0_65] : memref<2x16x256xf32, #tpu.memory_space<vmem>>, vector<1x16x256xf32>
    %115 = vector.shape_cast %114 : vector<1x16x256xf32> to vector<16x256xf32>
    %116 = vector.shape_cast %113 : vector<16x256xf32> to vector<1x16x256xf32>
    tpu.vector_store %arg8[%c0_63, %c0_64, %c0_65], %116 {strides = array<i32>} : memref<2x16x256xf32, #tpu.memory_space<vmem>>, vector<1x16x256xf32>,
    %c1_66 = arith.constant 1 : index
    %c0_67 = arith.constant 0 : index
    %c0_68 = arith.constant 0 : index
    %117 = vector.load %arg1[%c1_66, %c0_67, %c0_68] : memref<2x16x256xf32, #tpu.memory_space<vmem>>, vector<1x16x256xf32>
    %118 = vector.shape_cast %117 : vector<1x16x256xf32> to vector<16x256xf32>
    %cst_69 = arith.constant dense<0.000000e+00> : vector<32x256xf32>
    %119 = tpu.matmul %0, %118, %cst_69 {dimension_numbers = #tpu.dot_dimension_numbers<[1], [0], [0], [1], [0, 0, 1, 1], [], []>} : vector<32x16xf32>, vector<16x256xf32>, vector<32x256xf32> -> vector<32x256xf32>
    %120 = vector.broadcast %3 : vector<32x1xf32> to vector<32x256xf32>
    %121 = arith.addf %119, %120 : vector<32x256xf32>
    %cst_70 = arith.constant 6.000000e+00 : f32
    %122 = vector.broadcast %cst_70 : f32 to vector<32x256xf32>
    %123 = arith.divf %121, %122 : vector<32x256xf32>
    %cst_71 = arith.constant 5.000000e-01 : f32
    %124 = vector.broadcast %cst_71 : f32 to vector<32x256xf32>
    %125 = arith.addf %123, %124 : vector<32x256xf32>
    %cst_72 = arith.constant 0.000000e+00 : f32
    %cst_73 = arith.constant 1.000000e+00 : f32
    %126 = vector.broadcast %cst_72 : f32 to vector<32x256xf32>
    %127 = arith.maximumf %126, %125 : vector<32x256xf32>
    %128 = vector.broadcast %cst_73 : f32 to vector<32x256xf32>
    %129 = arith.minimumf %128, %127 : vector<32x256xf32>
    %130 = arith.mulf %121, %129 : vector<32x256xf32>
    %c17_i32_74 = arith.constant 17 : i32
    %131 = tpu.dynamic_rotate %130 by %c17_i32_74 dim 1 : vector<32x256xf32>, i32 -> vector<32x256xf32>
    %c0_75 = arith.constant 0 : index
    %c0_76 = arith.constant 0 : index
    %c0_77 = arith.constant 0 : index
    %132 = vector.load %arg3[%c0_75, %c0_76, %c0_77] : memref<9x32x256xf32, #tpu.memory_space<vmem>>, vector<1x32x256xf32>
    %133 = vector.shape_cast %132 : vector<1x32x256xf32> to vector<32x256xf32>
    %134 = arith.mulf %131, %133 : vector<32x256xf32>
    %c16_i32_78 = arith.constant 16 : i32
    %135 = tpu.dynamic_rotate %130 by %c16_i32_78 dim 1 : vector<32x256xf32>, i32 -> vector<32x256xf32>
    %c1_79 = arith.constant 1 : index
    %c0_80 = arith.constant 0 : index
    %c0_81 = arith.constant 0 : index
    %136 = vector.load %arg3[%c1_79, %c0_80, %c0_81] : memref<9x32x256xf32, #tpu.memory_space<vmem>>, vector<1x32x256xf32>
    %137 = vector.shape_cast %136 : vector<1x32x256xf32> to vector<32x256xf32>
    %138 = arith.mulf %135, %137 : vector<32x256xf32>
    %c15_i32_82 = arith.constant 15 : i32
    %139 = tpu.dynamic_rotate %130 by %c15_i32_82 dim 1 : vector<32x256xf32>, i32 -> vector<32x256xf32>
    %c2_83 = arith.constant 2 : index
    %c0_84 = arith.constant 0 : index
    %c0_85 = arith.constant 0 : index
    %140 = vector.load %arg3[%c2_83, %c0_84, %c0_85] : memref<9x32x256xf32, #tpu.memory_space<vmem>>, vector<1x32x256xf32>
    %141 = vector.shape_cast %140 : vector<1x32x256xf32> to vector<32x256xf32>
    %142 = arith.mulf %139, %141 : vector<32x256xf32>
    %c1_i32_86 = arith.constant 1 : i32
    %143 = tpu.dynamic_rotate %130 by %c1_i32_86 dim 1 : vector<32x256xf32>, i32 -> vector<32x256xf32>
    %c3_87 = arith.constant 3 : index
    %c0_88 = arith.constant 0 : index
    %c0_89 = arith.constant 0 : index
    %144 = vector.load %arg3[%c3_87, %c0_88, %c0_89] : memref<9x32x256xf32, #tpu.memory_space<vmem>>, vector<1x32x256xf32>
    %145 = vector.shape_cast %144 : vector<1x32x256xf32> to vector<32x256xf32>
    %146 = arith.mulf %143, %145 : vector<32x256xf32>
    %c4_90 = arith.constant 4 : index
    %c0_91 = arith.constant 0 : index
    %c0_92 = arith.constant 0 : index
    %147 = vector.load %arg3[%c4_90, %c0_91, %c0_92] : memref<9x32x256xf32, #tpu.memory_space<vmem>>, vector<1x32x256xf32>
    %148 = vector.shape_cast %147 : vector<1x32x256xf32> to vector<32x256xf32>
    %149 = arith.mulf %130, %148 : vector<32x256xf32>
    %c255_i32_93 = arith.constant 255 : i32
    %150 = tpu.dynamic_rotate %130 by %c255_i32_93 dim 1 : vector<32x256xf32>, i32 -> vector<32x256xf32>
    %c5_94 = arith.constant 5 : index
    %c0_95 = arith.constant 0 : index
    %c0_96 = arith.constant 0 : index
    %151 = vector.load %arg3[%c5_94, %c0_95, %c0_96] : memref<9x32x256xf32, #tpu.memory_space<vmem>>, vector<1x32x256xf32>
    %152 = vector.shape_cast %151 : vector<1x32x256xf32> to vector<32x256xf32>
    %153 = arith.mulf %150, %152 : vector<32x256xf32>
    %c241_i32_97 = arith.constant 241 : i32
    %154 = tpu.dynamic_rotate %130 by %c241_i32_97 dim 1 : vector<32x256xf32>, i32 -> vector<32x256xf32>
    %c6_98 = arith.constant 6 : index
    %c0_99 = arith.constant 0 : index
    %c0_100 = arith.constant 0 : index
    %155 = vector.load %arg3[%c6_98, %c0_99, %c0_100] : memref<9x32x256xf32, #tpu.memory_space<vmem>>, vector<1x32x256xf32>
    %156 = vector.shape_cast %155 : vector<1x32x256xf32> to vector<32x256xf32>
    %157 = arith.mulf %154, %156 : vector<32x256xf32>
    %c240_i32_101 = arith.constant 240 : i32
    %158 = tpu.dynamic_rotate %130 by %c240_i32_101 dim 1 : vector<32x256xf32>, i32 -> vector<32x256xf32>
    %c7_102 = arith.constant 7 : index
    %c0_103 = arith.constant 0 : index
    %c0_104 = arith.constant 0 : index
    %159 = vector.load %arg3[%c7_102, %c0_103, %c0_104] : memref<9x32x256xf32, #tpu.memory_space<vmem>>, vector<1x32x256xf32>
    %160 = vector.shape_cast %159 : vector<1x32x256xf32> to vector<32x256xf32>
    %161 = arith.mulf %158, %160 : vector<32x256xf32>
    %c239_i32_105 = arith.constant 239 : i32
    %162 = tpu.dynamic_rotate %130 by %c239_i32_105 dim 1 : vector<32x256xf32>, i32 -> vector<32x256xf32>
    %c8_106 = arith.constant 8 : index
    %c0_107 = arith.constant 0 : index
    %c0_108 = arith.constant 0 : index
    %163 = vector.load %arg3[%c8_106, %c0_107, %c0_108] : memref<9x32x256xf32, #tpu.memory_space<vmem>>, vector<1x32x256xf32>
    %164 = vector.shape_cast %163 : vector<1x32x256xf32> to vector<32x256xf32>
    %165 = arith.mulf %162, %164 : vector<32x256xf32>
    %166 = arith.addf %134, %138 : vector<32x256xf32>
    %167 = arith.addf %142, %146 : vector<32x256xf32>
    %168 = arith.addf %149, %153 : vector<32x256xf32>
    %169 = arith.addf %157, %161 : vector<32x256xf32>
    %170 = arith.addf %166, %167 : vector<32x256xf32>
    %171 = arith.addf %168, %169 : vector<32x256xf32>
    %172 = arith.addf %170, %171 : vector<32x256xf32>
    %173 = arith.addf %172, %165 : vector<32x256xf32>
    %174 = vector.broadcast %5 : vector<32x1xf32> to vector<32x256xf32>
    %175 = arith.addf %173, %174 : vector<32x256xf32>
    %cst_109 = arith.constant 6.000000e+00 : f32
    %176 = vector.broadcast %cst_109 : f32 to vector<32x256xf32>
    %177 = arith.divf %175, %176 : vector<32x256xf32>
    %cst_110 = arith.constant 5.000000e-01 : f32
    %178 = vector.broadcast %cst_110 : f32 to vector<32x256xf32>
    %179 = arith.addf %177, %178 : vector<32x256xf32>
    %cst_111 = arith.constant 0.000000e+00 : f32
    %cst_112 = arith.constant 1.000000e+00 : f32
    %180 = vector.broadcast %cst_111 : f32 to vector<32x256xf32>
    %181 = arith.maximumf %180, %179 : vector<32x256xf32>
    %182 = vector.broadcast %cst_112 : f32 to vector<32x256xf32>
    %183 = arith.minimumf %182, %181 : vector<32x256xf32>
    %184 = arith.mulf %175, %183 : vector<32x256xf32>
    %cst_113 = arith.constant dense<0.000000e+00> : vector<32xf32>
    %185 = vector.multi_reduction <add>, %184, %cst_113 [1] : vector<32x256xf32> to vector<32xf32>
    %186 = vector.shape_cast %185 : vector<32xf32> to vector<32x1xf32>
    %cst_114 = arith.constant 2.560000e+02 : f32
    %187 = vector.broadcast %cst_114 : f32 to vector<32x1xf32>
    %188 = arith.divf %186, %187 : vector<32x1xf32>
    %189 = vector.broadcast %188 : vector<32x1xf32> to vector<32x8xf32>
    %190 = arith.mulf %12, %189 : vector<32x8xf32>
    %cst_115 = arith.constant dense<0.000000e+00> : vector<8xf32>
    %191 = vector.multi_reduction <add>, %190, %cst_115 [0] : vector<32x8xf32> to vector<8xf32>
    %192 = vector.shape_cast %191 : vector<8xf32> to vector<1x8xf32>
    %193 = arith.addf %192, %15 : vector<1x8xf32>
    %cst_116 = arith.constant 0.000000e+00 : f32
    %194 = vector.broadcast %cst_116 : f32 to vector<1x8xf32>
    %195 = arith.maximumf %193, %194 : vector<1x8xf32>
    %196 = vector.broadcast %195 : vector<1x8xf32> to vector<32x8xf32>
    %197 = arith.mulf %14, %196 : vector<32x8xf32>
    %cst_117 = arith.constant dense<0.000000e+00> : vector<32xf32>
    %198 = vector.multi_reduction <add>, %197, %cst_117 [1] : vector<32x8xf32> to vector<32xf32>
    %199 = vector.shape_cast %198 : vector<32xf32> to vector<32x1xf32>
    %200 = arith.addf %199, %10 : vector<32x1xf32>
    %cst_118 = arith.constant 6.000000e+00 : f32
    %201 = vector.broadcast %cst_118 : f32 to vector<32x1xf32>
    %202 = arith.divf %200, %201 : vector<32x1xf32>
    %cst_119 = arith.constant 5.000000e-01 : f32
    %203 = vector.broadcast %cst_119 : f32 to vector<32x1xf32>
    %204 = arith.addf %202, %203 : vector<32x1xf32>
    %cst_120 = arith.constant 0.000000e+00 : f32
    %cst_121 = arith.constant 1.000000e+00 : f32
    %205 = vector.broadcast %cst_120 : f32 to vector<32x1xf32>
    %206 = arith.maximumf %205, %204 : vector<32x1xf32>
    %207 = vector.broadcast %cst_121 : f32 to vector<32x1xf32>
    %208 = arith.minimumf %207, %206 : vector<32x1xf32>
    %209 = vector.broadcast %208 : vector<32x1xf32> to vector<32x256xf32>
    %210 = arith.mulf %184, %209 : vector<32x256xf32>
    %cst_122 = arith.constant dense<0.000000e+00> : vector<16x256xf32>
    %211 = tpu.matmul %1, %210, %cst_122 {dimension_numbers = #tpu.dot_dimension_numbers<[1], [0], [0], [1], [0, 0, 1, 1], [], []>} : vector<16x32xf32>, vector<32x256xf32>, vector<16x256xf32> -> vector<16x256xf32>
    %212 = vector.broadcast %8 : vector<16x1xf32> to vector<16x256xf32>
    %213 = arith.addf %211, %212 : vector<16x256xf32>
    %214 = arith.addf %213, %118 : vector<16x256xf32>
    %c1_123 = arith.constant 1 : index
    %c0_124 = arith.constant 0 : index
    %c0_125 = arith.constant 0 : index
    %215 = vector.load %arg8[%c1_123, %c0_124, %c0_125] : memref<2x16x256xf32, #tpu.memory_space<vmem>>, vector<1x16x256xf32>
    %216 = vector.shape_cast %215 : vector<1x16x256xf32> to vector<16x256xf32>
    %217 = vector.shape_cast %214 : vector<16x256xf32> to vector<1x16x256xf32>
    tpu.vector_store %arg8[%c1_123, %c0_124, %c0_125], %217 {strides = array<i32>} : memref<2x16x256xf32, #tpu.memory_space<vmem>>, vector<1x16x256xf32>,
    return
  }
  func.func @transform_0(%arg0: i32) -> (i32, i32, i32) {
    %c0_i32 = arith.constant 0 : i32
    %c0_i32_0 = arith.constant 0 : i32
    %c0_i32_1 = arith.constant 0 : i32
    return %arg0, %c0_i32, %c0_i32_0 : i32, i32, i32
  }
  func.func @transform_1(%arg0: i32) -> (i32, i32) {
    %c0_i32 = arith.constant 0 : i32
    %c0_i32_0 = arith.constant 0 : i32
    %c0_i32_1 = arith.constant 0 : i32
    return %c0_i32, %c0_i32_0 : i32, i32
  }
  func.func @transform_2(%arg0: i32) -> (i32, i32, i32) {
    %c0_i32 = arith.constant 0 : i32
    %c0_i32_0 = arith.constant 0 : i32
    %c0_i32_1 = arith.constant 0 : i32
    %c0_i32_2 = arith.constant 0 : i32
    return %c0_i32, %c0_i32_0, %c0_i32_1 : i32, i32, i32
  }
  func.func @transform_3(%arg0: i32) -> (i32, i32, i32) {
    %c0_i32 = arith.constant 0 : i32
    %c0_i32_0 = arith.constant 0 : i32
    %c0_i32_1 = arith.constant 0 : i32
    %c0_i32_2 = arith.constant 0 : i32
    return %c0_i32, %c0_i32_0, %c0_i32_1 : i32, i32, i32
  }
  func.func @transform_4(%arg0: i32) -> (i32, i32) {
    %c0_i32 = arith.constant 0 : i32
    %c0_i32_0 = arith.constant 0 : i32
    %c0_i32_1 = arith.constant 0 : i32
    return %c0_i32, %c0_i32_0 : i32, i32
  }
  func.func @transform_5(%arg0: i32) -> (i32, i32, i32) {
    %c0_i32 = arith.constant 0 : i32
    %c0_i32_0 = arith.constant 0 : i32
    %c0_i32_1 = arith.constant 0 : i32
    %c0_i32_2 = arith.constant 0 : i32
    return %c0_i32, %c0_i32_0, %c0_i32_1 : i32, i32, i32
  }
  func.func @transform_6(%arg0: i32) -> (i32, i32) {
    %c0_i32 = arith.constant 0 : i32
    %c0_i32_0 = arith.constant 0 : i32
    %c0_i32_1 = arith.constant 0 : i32
    return %c0_i32, %c0_i32_0 : i32, i32
  }
  func.func @transform_7(%arg0: i32) -> (i32, i32, i32) {
    %c0_i32 = arith.constant 0 : i32
    %c0_i32_0 = arith.constant 0 : i32
    %c0_i32_1 = arith.constant 0 : i32
    return %arg0, %c0_i32, %c0_i32_0 : i32, i32, i32
  }
}

</mosaic_0001>

<bundles_post_ra>
// kernel: tpu_custom_call.1
= control target key start
LH: loop header
LB: loop body
LE: loop exit
PB: predicated region body
PF: predicated region fallthrough
CT: control target
= control target key end

     0   :  { %12 = vsyncpa [#allocation3], 0  ;;  %s3040_s0 = inlined_call_operand.vmem [shape: f32[2,16,256], index: 0, kind: input, shape index: {}]   ;;  %s3041_s1 = inlined_call_operand.vmem [shape: f32[32,16], index: 1, kind: input, shape index: {}]   ;;  %s3042_s2 = inlined_call_operand.hbm [shape: f32[9,32,256], index: 2, kind: input, shape index: {}]   ;;  %s3043_s3 = inlined_call_operand.vmem [shape: f32[2,32,8], index: 3, kind: input, shape index: {}]   ;;  %s3044_s4 = inlined_call_operand.vmem [shape: f32[16,32], index: 4, kind: input, shape index: {}]   ;;  %s3045_s5 = inlined_call_operand.vmem [shape: f32[4,32,1], index: 5, kind: input, shape index: {}]   ;;  %s3046_s6 = inlined_call_operand.vmem [shape: f32[1,8], index: 6, kind: input, shape index: {}]   ;;  %s3047_s7 = inlined_call_operand.hbm [shape: f32[2,16,256], index: 7, kind: output, shape index: {}]  }
   0x1   :  { %13 = vsyncpa [#allocation4], 0  ;;  %s1838_s24 = smov [#allocation2]  }
   0x2   :  { %s23_s25 = sshll.u32 %s1838_s24, 4  ;;  %s24_s25 = int_to_ptr.vmem [resolvable:$true] %s23_s25 }
   0x3   :  { %s1802_s26 = scalar_lea.vmem %s24_s25, 9216  ;;  %p1807_p1 = scmp.lt.s32.totalorder %s24_s25, %s24_s25 }
   0x4   :  { %p1803_p0 = scmp.ne.s32.totalorder %s24_s25, %s1802_s26  ;;  %p1808_p2 = scmp.lt.s32.totalorder %s1802_s26, %s1802_s26 }
   0x6   :  { %p1809_p3 = por %p1808_p2, %p1807_p1 }
   0x8   :  { %p1810_p4 = pnand %p1809_p3, %p1803_p0 }
   0xa   :  { %1813 = shalt.err (!%p1810_p4)
}
   0xb   :  { %s1839_s27 = smov 256   ;;  %s1840_s28 = smov 16  }
   0xc   :  { %29 = dma.hbm_to_vmem [thread:$0]  %s3042_s2, 9216, %s24_s25, [#allocation3], %s1839_s27, %s1839_s27, %s1840_s28  }
   0xd   :  { %1834 = dma.done.wait [#allocation3], 9216  }
   0xe   :  { %1835 = vsyncadd [#allocation3], 4294958080  ;;  %v3048_v0 = vmov 0.0   ;;  %v1842_v1 = vmov 0   ;;  %v77_v2 = vld [vmem:[%s3040_s0 + $0x18] sm:$0xff]  ;;  %v76_v3 = vld [vmem:[%s3040_s0 + $0x10] sm:$0xff] }
   0xf   :  { %175 = vmatprep.mubr.f32.mxu0 %v3048_v0  ;;  %1765 = vset.pattern.permute.xlu0 %v1842_v1  ;;  %v75_v4 = vld [vmem:[%s3040_s0 + $0x8] sm:$0xff]  ;;  %v74_v5 = vld [vmem:[%s3040_s0] sm:$0xff]  ;;  %vm98_vm0 = vcmask 130048   ;;  %v49_v8 = vld [vmem:[%s3045_s5 + $0x10] sm:$0xff]  ;;  %s1843_s13 = smov 17   ;;  %s1844_s14 = smov 15  }
  0x10   :  { %1766 = vset.pattern.permute.xlu1 %v1842_v1  ;;  %913 = vmatprep.mubr.f32.mxu1 %v3048_v0  ;;  %v41_v6 = vld [vmem:[%s3041_s1] sm:$0xff]  ;;  %v48_v9 = vld [vmem:[%s3045_s5 + $0x8] sm:$0xff]  ;;  %v50_v10 = vld [vmem:[%s3045_s5 + $0x18] sm:$0xff]  ;;  %s1845_s15 = smov 1   ;;  %s1846_s16 = smov 127   ;;  %vm748_vm9 = vcmask 64512  }
  0x11   :  { %139 = vmatprep.subr.mxu0 %v77_v2  ;;  %v47_v7 = vld [vmem:[%s3045_s5] sm:$0xff]  ;;  %90 = vperm.xlu1 %1766, %v49_v8   ;;  %v42_v11 = vld [vmem:[%s3041_s1 + $0x8] sm:$0xff]  ;;  %v43_v14 = vld [vmem:[%s3041_s1 + $0x10] sm:$0xff]  ;;  %s1847_s17 = smov 113   ;;  %s1848_s18 = smov 112   ;;  %vm842_vm10 = vcmask 261120  }
  0x12   :  { %140 = vmatpush1.msra.mxu0 %v76_v3  ;;  %80 = vperm.xlu0 %1765, %v47_v7   ;;  %v1722_v12 = vld [vmem:[%s3045_s5 + $0x20] sm:$0xff]  ;;  %v1723_v13 = vld [vmem:[%s3045_s5 + $0x28] sm:$0xff]  ;;  %v44_v15 = vld [vmem:[%s3041_s1 + $0x18] sm:$0xff]  ;;  %s1849_s19 = smov 111  }
  0x13   :  { %141 = vmatprep.subr.mxu0 %v75_v4 }
  0x14   :  { %142 = vmatpush1.msra.mxu0 %v74_v5 }
  0x15   :  { %1736 = vmatmul.mubr.msk.f32.vlgmr.msra.gmra.mxu0 %vm98_vm0, %v41_v6  ;;  %95 = vperm.xlu1 %1766, %v50_v10  }
  0x16   :  { %181 = vmatprep.mubr.f32.mxu0 %v3048_v0  ;;  %85 = vperm.xlu0 %1765, %v48_v9  }
  0x19   :  { %1737 = vmatmul.mubr.msk.f32.gmra.mxu0 %vm98_vm0, %v42_v11  ;;  %666 = vperm.xlu1 %1766, %v1723_v13  }
  0x1a   :  { %187 = vmatprep.mubr.f32.mxu0 %v3048_v0  ;;  %661 = vperm.xlu0 %1765, %v1722_v12  }
  0x1d   :  { %1738 = vmatmul.mubr.msk.f32.gmra.mxu0 %vm98_vm0, %v43_v14 }
  0x1e   :  { %193 = vmatprep.mubr.f32.mxu0 %v3048_v0 }
  0x21   :  { %1739 = vmatmul.mubr.msk.f32.gmra.mxu0 %vm98_vm0, %v44_v15 }
  0x22   :  { %1683 = vmatprep.mubr.f32.mxu0 %v3048_v0 }
  0x8c   :  { %v2007_v47 = vpop.permute.xlu1 %90 }
  0x8d   :  { %v1949_v16 = vpop.permute.xlu0 %80  ;;  %3070 = vst [vmem:[#allocation10_spill] sm:$0xff] %v2007_v47 }
  0x8e   :  { %3068 = vst [vmem:[#allocation8_spill] sm:$0xff] %v1949_v16 }
  0x90   :  { %v2043_v62 = vpop.permute.xlu1 %95 }
  0x91   :  { %v1952_v21 = vpop.permute.xlu0 %85  ;;  %3071 = vst [vmem:[#allocation11_spill] sm:$0xff] %v2043_v62 }
  0x92   :  { %3069 = vst [vmem:[#allocation9_spill] sm:$0xff] %v1952_v21 }
  0x94   :  { %v2097_v14 = vpop.permute.xlu1 %666 }
  0x95   :  { %v2091_v13 = vpop.permute.xlu0 %661  ;;  %3073 = vst [vmem:[#allocation13_spill] sm:$0xff] %v2097_v14 }
  0x96   :  { %3072 = vst [vmem:[#allocation12_spill] sm:$0xff] %v2091_v13 }
  0xd5   :  { %v177_v17 = vpop.f32.mrf.mxu0 }
  0xd6   :  { %v178_v18 = vadd.f32 %v177_v17, %v1949_v16 }
  0xd7   :  { %v179_v19 = vpop.f32.mrf.mxu0 }
  0xd8   :  { %v201_v20 = vmul.f32 0.16666667, %v178_v18  ;;  %v180_v33 = vadd.f32 %v179_v19, %v1949_v16  ;;  %v1724_v19 = vld [vmem:[%s3045_s5 + $0x30] sm:$0xff] }
  0xd9   :  { %v183_v22 = vpop.f32.mrf.mxu0 }
  0xda   :  { %v209_v23 = vadd.f32 0.5, %v201_v20  ;;  %v184_v24 = vadd.f32 %v183_v22, %v1952_v21  ;;  %v202_v35 = vmul.f32 0.16666667, %v180_v33 }
  0xdb   :  { %v185_v34 = vpop.f32.mrf.mxu0 }
  0xdc   :  { %v217_v25 = vmax.f32 %v209_v23, 0.0  ;;  %v203_v26 = vmul.f32 0.16666667, %v184_v24  ;;  %v186_v36 = vadd.f32 %v185_v34, %v1952_v21  ;;  %v210_v37 = vadd.f32 0.5, %v202_v35 }
  0xdd   :  { %v189_v46 = vpop.f32.mrf.mxu0 }
  0xde   :  { %v225_v27 = vmin.f32 %v217_v25, 1.0  ;;  %v211_v28 = vadd.f32 0.5, %v203_v26  ;;  %v204_v38 = vmul.f32 0.16666667, %v186_v36  ;;  %v218_v39 = vmax.f32 %v210_v37, 0.0  ;;  %v1725_v25 = vld [vmem:[%s3045_s5 + $0x38] sm:$0xff] }
  0xdf   :  { %v190_v48 = vadd.f32 %v189_v46, %v2007_v47  ;;  %v191_v49 = vpop.f32.mrf.mxu0 }
  0xe0   :  { %v1955_v29 = vmul.f32 %v225_v27, %v178_v18  ;;  %v219_v30 = vmax.f32 %v211_v28, 0.0  ;;  %v212_v40 = vadd.f32 0.5, %v204_v38  ;;  %v226_v41 = vmin.f32 %v218_v39, 1.0 }
  0xe1   :  { %v205_v50 = vmul.f32 0.16666667, %v190_v48  ;;  %v192_v51 = vadd.f32 %v191_v49, %v2007_v47  ;;  %v195_v61 = vpop.f32.mrf.mxu0  ;;  %v3050_v38 = vlaneseq  ;;  %v413_v49 = vld [vmem:[#allocation2 + $0x110] sm:$0xff] }
  0xe2   :  { %v227_v31 = vmin.f32 %v219_v30, 1.0  ;;  %241 = vrot.lane.b32.xlu0 %v1955_v29, %s1843_s13  ;;  %v220_v42 = vmax.f32 %v212_v40, 0.0  ;;  %v1991_v43 = vmul.f32 %v226_v41, %v180_v33  ;;  %v196_v63 = vadd.f32 %v195_v61, %v2043_v62  ;;  %v310_v61 = vld [vmem:[#allocation2 + $0x40] sm:$0xff] }
  0xe3   :  { %v213_v52 = vadd.f32 0.5, %v205_v50  ;;  %v206_v53 = vmul.f32 0.16666667, %v192_v51  ;;  %v197_v1 = vpop.f32.mrf.mxu0  ;;  %v2142_v41 = vand.u32 127, %v3050_v38  ;;  %v414_v50 = vld [vmem:[#allocation2 + $0x118] sm:$0xff] }
  0xe4   :  { %v1959_v32 = vmul.f32 %v227_v31, %v184_v24  ;;  %v228_v44 = vmin.f32 %v220_v42, 1.0  ;;  %v207_v2 = vmul.f32 0.16666667, %v196_v63  ;;  %v198_v3 = vadd.f32 %v197_v1, %v2043_v62  ;;  %v411_v42 = vld [vmem:[#allocation2 + $0x100] sm:$0xff] }
  0xe5   :  { %v221_v54 = vmax.f32 %v213_v52, 0.0  ;;  %v214_v55 = vadd.f32 0.5, %v206_v53  ;;  %vm259_vm1 = vcmp.lt.s32.totalorder %v2142_v41, 17  ;;  %vm300_vm2 = vcmp.lt.s32.totalorder %v2142_v41, 16  ;;  %v394_v52 = vld [vmem:[#allocation2 + $0xc0] sm:$0xff]  ;;  %v395_v53 = vld [vmem:[#allocation2 + $0xc8] sm:$0xff] }
  0xe6   :  { %243 = vrot.lane.b32.xlu1 %v1959_v32, %s1843_s13  ;;  %284 = vrot.lane.b32.xlu0 %v1955_v29, %s1840_s28  ;;  %v1997_v45 = vmul.f32 %v228_v44, %v186_v36  ;;  %v215_v4 = vadd.f32 0.5, %v207_v2  ;;  %v208_v5 = vmul.f32 0.16666667, %v198_v3  ;;  %vm342_vm3 = vcmp.lt.s32.totalorder %v2142_v41, 15 }
  0xe7   :  { %v229_v56 = vmin.f32 %v221_v54, 1.0  ;;  %v222_v57 = vmax.f32 %v214_v55, 0.0  ;;  %vm384_vm4 = vcmp.lt.s32.totalorder %v2142_v41, 1  ;;  %vm443_vm5 = vcmp.lt.s32.totalorder %v2142_v41, 127 }
  0xe8   :  { %v223_v6 = vmax.f32 %v215_v4, 0.0  ;;  %v216_v7 = vadd.f32 0.5, %v208_v5  ;;  %v2156_v55 = vmul.f32 %v414_v50, %v1997_v45  ;;  %vm485_vm6 = vcmp.lt.s32.totalorder %v2142_v41, 113  ;;  %v353_v4 = vld [vmem:[#allocation2 + $0x88] sm:$0xff] }
  0xe9   :  { %v2031_v58 = vmul.f32 %v229_v56, %v190_v48  ;;  %v230_v59 = vmin.f32 %v222_v57, 1.0  ;;  %v412_v48 = vld [vmem:[#allocation2 + $0x108] sm:$0xff]  ;;  %v2159_v56 = vmul.f32 %v413_v49, %v1959_v32  ;;  %v268_v57 = vld [vmem:[#allocation2] sm:$0xff]  ;;  %vm527_vm7 = vcmp.lt.s32.totalorder %v2142_v41, 112 }
  0xea   :  { %286 = vrot.lane.b32.xlu1 %v1959_v32, %s1840_s28  ;;  %326 = vrot.lane.b32.xlu0 %v1955_v29, %s1844_s14  ;;  %v231_v8 = vmin.f32 %v223_v6, 1.0  ;;  %v224_v9 = vmax.f32 %v216_v7, 0.0  ;;  %v2152_v54 = vmul.f32 %v412_v48, %v1991_v43  ;;  %vm569_vm8 = vcmp.lt.s32.totalorder %v2142_v41, 111 }
  0xeb   :  { %v2037_v60 = vmul.f32 %v230_v59, %v192_v51  ;;  %v2149_v51 = vmul.f32 %v411_v42, %v1955_v29 }
  0xec   :  { %v2071_v10 = vmul.f32 %v231_v8, %v196_v63  ;;  %v232_v11 = vmin.f32 %v224_v9, 1.0  ;;  %v311_v63 = vld [vmem:[#allocation2 + $0x48] sm:$0xff]  ;;  %v312_v9 = vld [vmem:[#allocation2 + $0x50] sm:$0xff] }
  0xee   :  { %328 = vrot.lane.b32.xlu1 %v1959_v32, %s1844_s14  ;;  %368 = vrot.lane.b32.xlu0 %v1955_v29, %s1845_s15  ;;  %v2077_v12 = vmul.f32 %v232_v11, %v198_v3  ;;  %v352_v3 = vld [vmem:[#allocation2 + $0x80] sm:$0xff]  ;;  %v313_v11 = vld [vmem:[#allocation2 + $0x58] sm:$0xff] }
  0xf2   :  { %370 = vrot.lane.b32.xlu1 %v1959_v32, %s1845_s15  ;;  %427 = vrot.lane.b32.xlu0 %v1955_v29, %s1846_s16 }
  0xf6   :  { %429 = vrot.lane.b32.xlu1 %v1959_v32, %s1846_s16  ;;  %469 = vrot.lane.b32.xlu0 %v1955_v29, %s1847_s17 }
  0xfa   :  { %471 = vrot.lane.b32.xlu1 %v1959_v32, %s1847_s17  ;;  %511 = vrot.lane.b32.xlu0 %v1955_v29, %s1848_s18 }
  0xfe   :  { %513 = vrot.lane.b32.xlu1 %v1959_v32, %s1848_s18  ;;  %553 = vrot.lane.b32.xlu0 %v1955_v29, %s1849_s19 }
 0x102   :  { %555 = vrot.lane.b32.xlu1 %v1959_v32, %s1849_s19  ;;  %249 = vrot.lane.b32.xlu0 %v1991_v43, %s1843_s13  ;;  %v269_v32 = vld [vmem:[#allocation2 + $0x8] sm:$0xff] }
 0x106   :  { %251 = vrot.lane.b32.xlu1 %v1997_v45, %s1843_s13  ;;  %292 = vrot.lane.b32.xlu0 %v1991_v43, %s1840_s28 }
 0x10a   :  { %294 = vrot.lane.b32.xlu1 %v1997_v45, %s1840_s28  ;;  %334 = vrot.lane.b32.xlu0 %v1991_v43, %s1844_s14 }
 0x10e   :  { %336 = vrot.lane.b32.xlu1 %v1997_v45, %s1844_s14  ;;  %376 = vrot.lane.b32.xlu0 %v1991_v43, %s1845_s15 }
 0x112   :  { %378 = vrot.lane.b32.xlu1 %v1997_v45, %s1845_s15  ;;  %435 = vrot.lane.b32.xlu0 %v1991_v43, %s1846_s16 }
 0x116   :  { %437 = vrot.lane.b32.xlu1 %v1997_v45, %s1846_s16  ;;  %477 = vrot.lane.b32.xlu0 %v1991_v43, %s1847_s17 }
 0x11a   :  { %479 = vrot.lane.b32.xlu1 %v1997_v45, %s1847_s17  ;;  %519 = vrot.lane.b32.xlu0 %v1991_v43, %s1848_s18 }
 0x11e   :  { %521 = vrot.lane.b32.xlu1 %v1997_v45, %s1848_s18  ;;  %561 = vrot.lane.b32.xlu0 %v1991_v43, %s1849_s19 }
 0x122   :  { %563 = vrot.lane.b32.xlu1 %v1997_v45, %s1849_s19  ;;  %245 = vrot.lane.b32.xlu0 %v2031_v58, %s1843_s13 }
 0x126   :  { %253 = vrot.lane.b32.xlu1 %v2037_v60, %s1843_s13  ;;  %288 = vrot.lane.b32.xlu0 %v2031_v58, %s1840_s28 }
 0x12a   :  { %296 = vrot.lane.b32.xlu1 %v2037_v60, %s1840_s28  ;;  %330 = vrot.lane.b32.xlu0 %v2031_v58, %s1844_s14 }
 0x12e   :  { %338 = vrot.lane.b32.xlu1 %v2037_v60, %s1844_s14  ;;  %372 = vrot.lane.b32.xlu0 %v2031_v58, %s1845_s15 }
 0x132   :  { %380 = vrot.lane.b32.xlu1 %v2037_v60, %s1845_s15  ;;  %431 = vrot.lane.b32.xlu0 %v2031_v58, %s1846_s16 }
 0x136   :  { %439 = vrot.lane.b32.xlu1 %v2037_v60, %s1846_s16  ;;  %473 = vrot.lane.b32.xlu0 %v2031_v58, %s1847_s17 }
 0x13a   :  { %481 = vrot.lane.b32.xlu1 %v2037_v60, %s1847_s17  ;;  %515 = vrot.lane.b32.xlu0 %v2031_v58, %s1848_s18 }
 0x13e   :  { %523 = vrot.lane.b32.xlu1 %v2037_v60, %s1848_s18  ;;  %557 = vrot.lane.b32.xlu0 %v2031_v58, %s1849_s19 }
 0x142   :  { %565 = vrot.lane.b32.xlu1 %v2037_v60, %s1849_s19  ;;  %247 = vrot.lane.b32.xlu0 %v2071_v10, %s1843_s13 }
 0x146   :  { %255 = vrot.lane.b32.xlu1 %v2077_v12, %s1843_s13  ;;  %290 = vrot.lane.b32.xlu0 %v2071_v10, %s1840_s28 }
 0x14a   :  { %298 = vrot.lane.b32.xlu1 %v2077_v12, %s1840_s28  ;;  %332 = vrot.lane.b32.xlu0 %v2071_v10, %s1844_s14 }
 0x14e   :  { %340 = vrot.lane.b32.xlu1 %v2077_v12, %s1844_s14  ;;  %374 = vrot.lane.b32.xlu0 %v2071_v10, %s1845_s15 }
 0x152   :  { %382 = vrot.lane.b32.xlu1 %v2077_v12, %s1845_s15  ;;  %433 = vrot.lane.b32.xlu0 %v2071_v10, %s1846_s16 }
 0x154   :  { %v242_v15 = vpop.permute.xlu0 %241 }
 0x156   :  { %441 = vrot.lane.b32.xlu1 %v2077_v12, %s1846_s16  ;;  %475 = vrot.lane.b32.xlu0 %v2071_v10, %s1847_s17 }
 0x158   :  { %v2103_v17 = vpop.permute.xlu1 %243  ;;  %v285_v18 = vpop.permute.xlu0 %284 }
 0x15a   :  { %483 = vrot.lane.b32.xlu1 %v2077_v12, %s1847_s17  ;;  %517 = vrot.lane.b32.xlu0 %v2071_v10, %s1848_s18 }
 0x15c   :  { %v287_v20 = vpop.permute.xlu1 %286  ;;  %v327_v22 = vpop.permute.xlu0 %326 }
 0x15e   :  { %525 = vrot.lane.b32.xlu1 %v2077_v12, %s1848_s18  ;;  %671 = vperm.xlu0 %1765, %v1724_v19  }
 0x160   :  { %v2114_v23 = vpop.permute.xlu1 %328  ;;  %v369_v24 = vpop.permute.xlu0 %368 }
 0x162   :  { %559 = vrot.lane.b32.xlu1 %v2071_v10, %s1849_s19  ;;  %567 = vrot.lane.b32.xlu0 %v2077_v12, %s1849_s19 }
 0x164   :  { %v2123_v26 = vpop.permute.xlu1 %370  ;;  %v2125_v27 = vpop.permute.xlu0 %427 }
 0x166   :  { %676 = vperm.xlu1 %1766, %v1725_v25  }
 0x168   :  { %v2127_v28 = vpop.permute.xlu1 %429  ;;  %v2129_v30 = vpop.permute.xlu0 %469 }
 0x16c   :  { %v2131_v31 = vpop.permute.xlu1 %471  ;;  %v2133_v33 = vpop.permute.xlu0 %511 }
 0x170   :  { %v2135_v34 = vpop.permute.xlu1 %513  ;;  %v2137_v35 = vpop.permute.xlu0 %553 }
 0x174   :  { %v2139_v36 = vpop.permute.xlu1 %555  ;;  %v250_v37 = vpop.permute.xlu0 %249 }
 0x175   :  { %v260_v59 = vsel %vm259_vm1, %v242_v15, %v250_v37  ;;  %v264_v29 = vsel %vm259_vm1, %v250_v37, %v242_v15  ;;  %v270_v37 = vld [vmem:[#allocation2 + $0x10] sm:$0xff] }
 0x176   :  { %v276_v48 = vmul.f32 %v268_v57, %v264_v29  ;;  %v277_v49 = vmul.f32 %v269_v32, %v260_v59 }
 0x178   :  { %v252_v39 = vpop.permute.xlu1 %251  ;;  %v293_v40 = vpop.permute.xlu0 %292 }
 0x179   :  { %v301_v43 = vsel %vm300_vm2, %v285_v18, %v293_v40  ;;  %v305_v1 = vsel %vm300_vm2, %v293_v40, %v285_v18  ;;  %v271_v40 = vld [vmem:[#allocation2 + $0x18] sm:$0xff] }
 0x17a   :  { %v318_v42 = vmul.f32 %v310_v61, %v305_v1  ;;  %v355_v1 = vld [vmem:[#allocation2 + $0x98] sm:$0xff] }
 0x17c   :  { %v295_v44 = vpop.permute.xlu1 %294  ;;  %v335_v46 = vpop.permute.xlu0 %334  ;;  %v595_v29 = vadd.f32 %v318_v42, %v276_v48  ;;  %v496_v42 = vld [vmem:[#allocation2 + $0x188] sm:$0xff]  ;;  %v537_v48 = vld [vmem:[#allocation2 + $0x1c0] sm:$0xff] }
 0x17d   :  { %v343_v5 = vsel %vm342_vm3, %v327_v22, %v335_v46  ;;  %v347_v6 = vsel %vm342_vm3, %v335_v46, %v327_v22  ;;  %v302_v15 = vsel %vm300_vm2, %v287_v20, %v295_v44  ;;  %v306_v18 = vsel %vm300_vm2, %v295_v44, %v287_v20 }
 0x17e   :  { %v261_v22 = vsel %vm259_vm1, %v2103_v17, %v252_v39  ;;  %v319_v46 = vmul.f32 %v311_v63, %v301_v43  ;;  %v360_v50 = vmul.f32 %v352_v3, %v347_v6  ;;  %v320_v44 = vmul.f32 %v312_v9, %v306_v18  ;;  %v354_v43 = vld [vmem:[#allocation2 + $0x90] sm:$0xff]  ;;  %v453_v6 = vld [vmem:[#allocation2 + $0x140] sm:$0xff] }
 0x17f   :  { %v279_v61 = vmul.f32 %v271_v40, %v261_v22  ;;  %v495_v40 = vld [vmem:[#allocation2 + $0x180] sm:$0xff] }
 0x180   :  { %v337_v45 = vpop.permute.xlu1 %336  ;;  %v377_v2 = vpop.permute.xlu0 %376  ;;  %v596_v63 = vadd.f32 %v319_v46, %v277_v49  ;;  %v538_v49 = vld [vmem:[#allocation2 + $0x1c8] sm:$0xff] }
 0x181   :  { %v385_v7 = vsel %vm384_vm4, %v369_v24, %v377_v2  ;;  %v389_v8 = vsel %vm384_vm4, %v377_v2, %v369_v24  ;;  %v265_v24 = vsel %vm259_vm1, %v252_v39, %v2103_v17  ;;  %v361_v2 = vmul.f32 %v353_v4, %v343_v5 }
 0x182   :  { %v402_v19 = vmul.f32 %v394_v52, %v389_v8  ;;  %v403_v25 = vmul.f32 %v395_v53, %v385_v7  ;;  %v321_v52 = vmul.f32 %v313_v11, %v302_v15  ;;  %v396_v53 = vld [vmem:[#allocation2 + $0xd0] sm:$0xff]  ;;  %v397_v7 = vld [vmem:[#allocation2 + $0xd8] sm:$0xff]  ;;  %v278_v39 = vmul.f32 %v270_v37, %v265_v24 }
 0x183   :  { %v344_v32 = vsel %vm342_vm3, %v2114_v23, %v337_v45  ;;  %v348_v3 = vsel %vm342_vm3, %v337_v45, %v2114_v23 }
 0x184   :  { %v379_v0 = vpop.permute.xlu1 %378  ;;  %v436_v20 = vpop.permute.xlu0 %435  ;;  %v603_v57 = vadd.f32 %v402_v19, %v360_v50  ;;  %v604_v59 = vadd.f32 %v403_v25, %v361_v2  ;;  %v2206_v18 = vadd.f32 %v320_v44, %v278_v39  ;;  %v2208_v19 = vadd.f32 %v321_v52, %v279_v61  ;;  %v456_v44 = vld [vmem:[#allocation2 + $0x158] sm:$0xff] }
 0x185   :  { %v386_v8 = vsel %vm384_vm4, %v2123_v26, %v379_v0  ;;  %v390_v17 = vsel %vm384_vm4, %v379_v0, %v2123_v26  ;;  %v454_v0 = vld [vmem:[#allocation2 + $0x148] sm:$0xff]  ;;  %v444_v26 = vsel %vm443_vm5, %v2125_v27, %v436_v20  ;;  %v448_v9 = vsel %vm443_vm5, %v436_v20, %v2125_v27  ;;  %v455_v20 = vld [vmem:[#allocation2 + $0x150] sm:$0xff]  ;;  %v498_v39 = vld [vmem:[#allocation2 + $0x198] sm:$0xff] }
 0x186   :  { %v404_v4 = vmul.f32 %v396_v53, %v390_v17  ;;  %v405_v5 = vmul.f32 %v397_v7, %v386_v8  ;;  %v362_v23 = vmul.f32 %v354_v43, %v348_v3  ;;  %v363_v45 = vmul.f32 %v355_v1, %v344_v32  ;;  %v497_v17 = vld [vmem:[#allocation2 + $0x190] sm:$0xff] }
 0x187   :  { %v627_v25 = vadd.f32 %v603_v57, %v595_v29  ;;  %v628_v37 = vadd.f32 %v604_v59, %v596_v63  ;;  %v461_v22 = vmul.f32 %v453_v6, %v444_v26  ;;  %v462_v24 = vmul.f32 %v454_v0, %v448_v9 }
 0x188   :  { %v438_v11 = vpop.permute.xlu1 %437  ;;  %v478_v15 = vpop.permute.xlu0 %477  ;;  %v605_v50 = vadd.f32 %v404_v4, %v362_v23  ;;  %v606_v2 = vadd.f32 %v405_v5, %v363_v45  ;;  %v539_v5 = vld [vmem:[#allocation2 + $0x1d0] sm:$0xff]  ;;  %v580_v23 = vld [vmem:[#allocation2 + $0x208] sm:$0xff] }
 0x189   :  { %v486_v27 = vsel %vm485_vm6, %v2129_v30, %v478_v15  ;;  %v490_v46 = vsel %vm485_vm6, %v478_v15, %v2129_v30  ;;  %v445_v52 = vsel %vm443_vm5, %v2127_v28, %v438_v11  ;;  %v449_v53 = vsel %vm443_vm5, %v438_v11, %v2127_v28  ;;  %v579_v15 = vld [vmem:[#allocation2 + $0x200] sm:$0xff] }
 0x18a   :  { %v503_v59 = vmul.f32 %v495_v40, %v486_v27  ;;  %v504_v29 = vmul.f32 %v496_v42, %v490_v46  ;;  %v611_v1 = vadd.f32 %v461_v22, %v2149_v51  ;;  %v612_v32 = vadd.f32 %v462_v24, %v2152_v54 }
 0x18b   :  { %v463_v3 = vmul.f32 %v455_v20, %v445_v52  ;;  %v464_v4 = vmul.f32 %v456_v44, %v449_v53 }
 0x18c   :  { %v480_v7 = vpop.permute.xlu1 %479  ;;  %v520_v8 = vpop.permute.xlu0 %519 }
 0x18d   :  { %v487_v30 = vsel %vm485_vm6, %v2131_v31, %v480_v7  ;;  %v491_v61 = vsel %vm485_vm6, %v480_v7, %v2131_v31  ;;  %v528_v57 = vsel %vm527_vm7, %v2133_v33, %v520_v8  ;;  %v532_v28 = vsel %vm527_vm7, %v520_v8, %v2133_v33  ;;  %v540_v31 = vld [vmem:[#allocation2 + $0x1d8] sm:$0xff]  ;;  %v581_v7 = vld [vmem:[#allocation2 + $0x210] sm:$0xff] }
 0x18e   :  { %v545_v63 = vmul.f32 %v537_v48, %v528_v57  ;;  %v546_v43 = vmul.f32 %v538_v49, %v532_v28  ;;  %v505_v6 = vmul.f32 %v497_v17, %v487_v30  ;;  %v506_v0 = vmul.f32 %v498_v39, %v491_v61  ;;  %v582_v8 = vld [vmem:[#allocation2 + $0x218] sm:$0xff] }
 0x18f   :  { %v613_v46 = vadd.f32 %v463_v3, %v2159_v56  ;;  %v614_v48 = vadd.f32 %v464_v4, %v2156_v55  ;;  %v630_v30 = vadd.f32 %v606_v2, %v2208_v19 }
 0x190   :  { %v619_v26 = vadd.f32 %v545_v63, %v503_v59  ;;  %v620_v9 = vadd.f32 %v546_v43, %v504_v29  ;;  %v522_v11 = vpop.permute.xlu1 %521  ;;  %v562_v33 = vpop.permute.xlu0 %561 }
 0x191   :  { %v529_v45 = vsel %vm527_vm7, %v2135_v34, %v522_v11  ;;  %v533_v51 = vsel %vm527_vm7, %v522_v11, %v2135_v34  ;;  %v570_v54 = vsel %vm569_vm8, %v2137_v35, %v562_v33  ;;  %v574_v40 = vsel %vm569_vm8, %v562_v33, %v2137_v35 }
 0x192   :  { %v635_v22 = vadd.f32 %v619_v26, %v611_v1  ;;  %v636_v24 = vadd.f32 %v620_v9, %v612_v32  ;;  %v547_v42 = vmul.f32 %v539_v5, %v529_v45  ;;  %v548_v27 = vmul.f32 %v540_v31, %v533_v51 }
 0x193   :  { %v587_v49 = vmul.f32 %v579_v15, %v570_v54  ;;  %v588_v20 = vmul.f32 %v580_v23, %v574_v40  ;;  %v629_v35 = vadd.f32 %v605_v50, %v2206_v18 }
 0x194   :  { %v621_v44 = vadd.f32 %v547_v42, %v505_v6  ;;  %v622_v34 = vadd.f32 %v548_v27, %v506_v0  ;;  %v644_v52 = vadd.f32 %v636_v24, %v628_v37  ;;  %v643_v53 = vadd.f32 %v635_v22, %v627_v25  ;;  %v564_v17 = vpop.permute.xlu1 %563  ;;  %v2252_v39 = vpop.permute.xlu0 %245 }
 0x195   :  { %v571_v56 = vsel %vm569_vm8, %v2139_v36, %v564_v17  ;;  %v575_v55 = vsel %vm569_vm8, %v564_v17, %v2139_v36 }
 0x196   :  { %v637_v61 = vadd.f32 %v621_v44, %v613_v46  ;;  %v638_v37 = vadd.f32 %v622_v34, %v614_v48  ;;  %v651_v25 = vadd.f32 %v643_v53, %v587_v49  ;;  %v652_v57 = vadd.f32 %v644_v52, %v588_v20 }
 0x197   :  { %v589_v28 = vmul.f32 %v581_v7, %v571_v56  ;;  %v590_v59 = vmul.f32 %v582_v8, %v575_v55 }
 0x198   :  { %v646_v29 = vadd.f32 %v638_v37, %v630_v30  ;;  %v645_v63 = vadd.f32 %v637_v61, %v629_v35  ;;  %v254_v43 = vpop.permute.xlu1 %253  ;;  %v2262_v18 = vpop.permute.xlu0 %288  ;;  %v679_v19 = vadd.f32 %v2091_v13, %v651_v25  ;;  %v680_v50 = vadd.f32 %v2091_v13, %v652_v57 }
 0x19a   :  { %v653_v2 = vadd.f32 %v645_v63, %v589_v28  ;;  %v654_v1 = vadd.f32 %v646_v29, %v590_v59  ;;  %v687_v32 = vmul.f32 0.16666667, %v679_v19  ;;  %v688_v3 = vmul.f32 0.16666667, %v680_v50  ;;  %v541_v63 = vld [vmem:[#allocation2 + $0x1e0] sm:$0xff] }
 0x19c   :  { %v2266_v36 = vpop.permute.xlu1 %296  ;;  %v2268_v4 = vpop.permute.xlu0 %330  ;;  %v681_v5 = vadd.f32 %v2097_v14, %v653_v2  ;;  %v682_v31 = vadd.f32 %v2097_v14, %v654_v1  ;;  %v695_v6 = vadd.f32 0.5, %v687_v32  ;;  %v696_v0 = vadd.f32 0.5, %v688_v3  ;;  %v398_v3 = vld [vmem:[#allocation2 + $0xe0] sm:$0xff] }
 0x19d   :  { %v262_v1 = vsel %vm259_vm1, %v2252_v39, %v254_v43  ;;  %v266_v32 = vsel %vm259_vm1, %v254_v43, %v2252_v39 }
 0x19e   :  { %v689_v26 = vmul.f32 0.16666667, %v681_v5  ;;  %v690_v9 = vmul.f32 0.16666667, %v682_v31  ;;  %v703_v11 = vmax.f32 %v695_v6, 0.0  ;;  %v704_v15 = vmax.f32 %v696_v0, 0.0 }
 0x19f   :  { %v415_v0 = vld [vmem:[#allocation2 + $0x120] sm:$0xff] }
 0x1a0   :  { %v2272_v23 = vpop.permute.xlu1 %338  ;;  %v373_v33 = vpop.permute.xlu0 %372  ;;  %v697_v45 = vadd.f32 0.5, %v689_v26  ;;  %v698_v51 = vadd.f32 0.5, %v690_v9  ;;  %v711_v54 = vmin.f32 %v703_v11, 1.0  ;;  %v712_v40 = vmin.f32 %v704_v15, 1.0  ;;  %v457_v26 = vld [vmem:[#allocation2 + $0x160] sm:$0xff]  ;;  %v458_v9 = vld [vmem:[#allocation2 + $0x168] sm:$0xff] }
 0x1a1   :  { %v423_v14 = vmul.f32 %v415_v0, %v2031_v58  ;;  %v418_v58 = vld [vmem:[#allocation2 + $0x138] sm:$0xff] }
 0x1a2   :  { %v705_v22 = vmax.f32 %v697_v45, 0.0  ;;  %v706_v24 = vmax.f32 %v698_v51, 0.0  ;;  %v2274_v42 = vmul.f32 %v711_v54, %v679_v19  ;;  %v2276_v27 = vmul.f32 %v712_v40, %v680_v50  ;;  %v542_v19 = vld [vmem:[#allocation2 + $0x1e8] sm:$0xff]  ;;  %v499_v45 = vld [vmem:[#allocation2 + $0x1a0] sm:$0xff] }
 0x1a3   :  { %v500_v51 = vld [vmem:[#allocation2 + $0x1a8] sm:$0xff]  ;;  %v314_v54 = vld [vmem:[#allocation2 + $0x60] sm:$0xff] }
 0x1a4   :  { %3074 = vst [vmem:[#allocation14_spill] sm:$0xff] %v2276_v27  ;;  %v381_v46 = vpop.permute.xlu1 %380  ;;  %v432_v48 = vpop.permute.xlu0 %431  ;;  %v713_v49 = vmin.f32 %v705_v22, 1.0  ;;  %v714_v20 = vmin.f32 %v706_v24, 1.0  ;;  %v727_v44 = vadd.f32 %v2276_v27, %v2274_v42  ;;  %v315_v40 = vld [vmem:[#allocation2 + $0x68] sm:$0xff]  ;;  %v307_v22 = vsel %vm300_vm2, %v2266_v36, %v2262_v18 }
 0x1a5   :  { %v391_v6 = vsel %vm384_vm4, %v381_v46, %v373_v33  ;;  %v416_v24 = vld [vmem:[#allocation2 + $0x128] sm:$0xff] }
 0x1a6   :  { %v2280_v34 = vmul.f32 %v713_v49, %v681_v5  ;;  %v2282_v52 = vmul.f32 %v714_v20, %v682_v31  ;;  %728 = vadd.xlane.f32.xlu0 %v727_v44  ;;  %v399_v5 = vld [vmem:[#allocation2 + $0xe8] sm:$0xff]  ;;  %v387_v31 = vsel %vm384_vm4, %v373_v33, %v381_v46  ;;  %v303_v33 = vsel %vm300_vm2, %v2262_v18, %v2266_v36  ;;  %v356_v44 = vld [vmem:[#allocation2 + $0xa0] sm:$0xff] }
 0x1a7   :  { %v272_v18 = vld [vmem:[#allocation2 + $0x20] sm:$0xff]  ;;  %v273_v36 = vld [vmem:[#allocation2 + $0x28] sm:$0xff]  ;;  %v323_v38 = vmul.f32 %v315_v40, %v303_v33  ;;  %v424_v13 = vmul.f32 %v416_v24, %v2037_v60  ;;  %v401_v40 = vld [vmem:[#allocation2 + $0xf8] sm:$0xff] }
 0x1a8   :  { %v440_v53 = vpop.permute.xlu1 %439  ;;  %v474_v7 = vpop.permute.xlu0 %473  ;;  %v730_v8 = vadd.f32 %v2282_v52, %v2280_v34 }
 0x1a9   :  { %v446_v11 = vsel %vm443_vm5, %v432_v48, %v440_v53  ;;  %v450_v15 = vsel %vm443_vm5, %v440_v53, %v432_v48  ;;  %v357_v53 = vld [vmem:[#allocation2 + $0xa8] sm:$0xff] }
 0x1aa   :  { %731 = vadd.xlane.f32.xlu1 %v730_v8  ;;  %v349_v8 = vsel %vm342_vm3, %v2272_v23, %v2268_v4 }
 0x1ab   :  { %v364_v62 = vmul.f32 %v356_v44, %v349_v8  ;;  %v501_v44 = vld [vmem:[#allocation2 + $0x1b0] sm:$0xff] }
 0x1ac   :  { %v482_v17 = vpop.permute.xlu1 %481  ;;  %v516_v35 = vpop.permute.xlu0 %515  ;;  %v316_v8 = vld [vmem:[#allocation2 + $0x70] sm:$0xff] }
 0x1ad   :  { %v488_v39 = vsel %vm485_vm6, %v474_v7, %v482_v17  ;;  %v492_v43 = vsel %vm485_vm6, %v482_v17, %v474_v7  ;;  %v345_v7 = vsel %vm342_vm3, %v2268_v4, %v2272_v23  ;;  %v406_v17 = vmul.f32 %v398_v3, %v391_v6 }
 0x1ae   :  { %v365_v47 = vmul.f32 %v357_v53, %v345_v7  ;;  %v280_v4 = vmul.f32 %v272_v18, %v266_v32  ;;  %v281_v23 = vmul.f32 %v273_v36, %v262_v1  ;;  %v502_v53 = vld [vmem:[#allocation2 + $0x1b8] sm:$0xff]  ;;  %v358_v36 = vld [vmem:[#allocation2 + $0xb0] sm:$0xff] }
 0x1af   :  { %v607_v3 = vadd.f32 %v406_v17, %v364_v62  ;;  %v317_v17 = vld [vmem:[#allocation2 + $0x78] sm:$0xff] }
 0x1b0   :  { %v524_v30 = vpop.permute.xlu1 %523  ;;  %v2286_v56 = vpop.permute.xlu0 %557 }
 0x1b1   :  { %v530_v50 = vsel %vm527_vm7, %v516_v35, %v524_v30  ;;  %v534_v2 = vsel %vm527_vm7, %v524_v30, %v516_v35  ;;  %v407_v35 = vmul.f32 %v399_v5, %v387_v31  ;;  %v465_v30 = vmul.f32 %v457_v26, %v446_v11 }
 0x1b2   :  { %v549_v46 = vmul.f32 %v541_v63, %v530_v50  ;;  %v550_v48 = vmul.f32 %v542_v19, %v534_v2  ;;  %v466_v63 = vmul.f32 %v458_v9, %v450_v15  ;;  %v507_v19 = vmul.f32 %v499_v45, %v488_v39 }
 0x1b3   :  { %v508_v50 = vmul.f32 %v500_v51, %v492_v43  ;;  %v322_v2 = vmul.f32 %v314_v54, %v307_v22  ;;  %v608_v5 = vadd.f32 %v407_v35, %v365_v47  ;;  %v615_v31 = vadd.f32 %v465_v30, %v423_v14  ;;  %v417_v51 = vld [vmem:[#allocation2 + $0x130] sm:$0xff]  ;;  %v544_v54 = vld [vmem:[#allocation2 + $0x1f8] sm:$0xff] }
 0x1b4   :  { %v2288_v55 = vpop.permute.xlu1 %565  ;;  %v2290_v61 = vpop.permute.xlu0 %247  ;;  %v623_v21 = vadd.f32 %v549_v46, %v507_v19  ;;  %v616_v6 = vadd.f32 %v466_v63, %v424_v13  ;;  %v600_v11 = vadd.f32 %v323_v38, %v281_v23  ;;  %v425_v62 = vmul.f32 %v417_v51, %v2071_v10  ;;  %v543_v43 = vld [vmem:[#allocation2 + $0x1f0] sm:$0xff]  ;;  %v359_v30 = vld [vmem:[#allocation2 + $0xb8] sm:$0xff] }
 0x1b5   :  { %v624_v16 = vadd.f32 %v550_v48, %v508_v50  ;;  %v599_v9 = vadd.f32 %v322_v2, %v280_v4  ;;  %v572_v32 = vsel %vm569_vm8, %v2286_v56, %v2288_v55  ;;  %v576_v47 = vsel %vm569_vm8, %v2288_v55, %v2286_v56  ;;  %v583_v55 = vld [vmem:[#allocation2 + $0x220] sm:$0xff]  ;;  %v400_v10 = vld [vmem:[#allocation2 + $0xf0] sm:$0xff]  ;;  %v275_v23 = vld [vmem:[#allocation2 + $0x38] sm:$0xff] }
 0x1b6   :  { %v639_v15 = vadd.f32 %v623_v21, %v615_v31  ;;  %v632_v39 = vadd.f32 %v608_v5, %v600_v11  ;;  %v426_v21 = vmul.f32 %v418_v58, %v2077_v12  ;;  %v459_v22 = vld [vmem:[#allocation2 + $0x170] sm:$0xff]  ;;  %v591_v31 = vmul.f32 %v583_v55, %v572_v32 }
 0x1b7   :  { %v640_v45 = vadd.f32 %v624_v16, %v616_v6  ;;  %v631_v60 = vadd.f32 %v607_v3, %v599_v9  ;;  %v274_v4 = vld [vmem:[#allocation2 + $0x30] sm:$0xff] }
 0x1b8   :  { %v2292_v37 = vpop.permute.xlu1 %255  ;;  %v2294_v25 = vpop.permute.xlu0 %290 }
 0x1b9   :  { %v647_v16 = vadd.f32 %v639_v15, %v631_v60  ;;  %v648_v13 = vadd.f32 %v640_v45, %v632_v39  ;;  %v263_v14 = vsel %vm259_vm1, %v2290_v61, %v2292_v37  ;;  %v267_v38 = vsel %vm259_vm1, %v2292_v37, %v2290_v61  ;;  %v460_v37 = vld [vmem:[#allocation2 + $0x178] sm:$0xff] }
 0x1ba   :  { %v282_v60 = vmul.f32 %v274_v4, %v267_v38 }
 0x1bb   :  { %v655_v58 = vadd.f32 %v647_v16, %v591_v31 }
 0x1bc   :  { %v2296_v57 = vpop.permute.xlu1 %298  ;;  %v2298_v28 = vpop.permute.xlu0 %332 }
 0x1bd   :  { %v304_v35 = vsel %vm300_vm2, %v2294_v25, %v2296_v57 }
 0x1be   :  { %v325_v9 = vmul.f32 %v317_v17, %v304_v35 }
 0x1c0   :  { %v2300_v59 = vpop.permute.xlu1 %340  ;;  %v2302_v29 = vpop.permute.xlu0 %374 }
 0x1c1   :  { %v346_v63 = vsel %vm342_vm3, %v2298_v28, %v2300_v59  ;;  %v350_v19 = vsel %vm342_vm3, %v2300_v59, %v2298_v28  ;;  %v283_v28 = vmul.f32 %v275_v23, %v263_v14 }
 0x1c2   :  { %v366_v11 = vmul.f32 %v358_v36, %v350_v19  ;;  %v367_v15 = vmul.f32 %v359_v30, %v346_v63 }
 0x1c3   :  { %v602_v55 = vadd.f32 %v325_v9, %v283_v28 }
 0x1c4   :  { %v383_v49 = vpop.permute.xlu1 %382  ;;  %v434_v20 = vpop.permute.xlu0 %433 }
 0x1c5   :  { %v388_v12 = vsel %vm384_vm4, %v2302_v29, %v383_v49  ;;  %v392_v33 = vsel %vm384_vm4, %v383_v49, %v2302_v29  ;;  %v584_v49 = vld [vmem:[#allocation2 + $0x228] sm:$0xff] }
 0x1c6   :  { %v408_v50 = vmul.f32 %v400_v10, %v392_v33  ;;  %v409_v2 = vmul.f32 %v401_v40, %v388_v12  ;;  %v592_v6 = vmul.f32 %v584_v49, %v576_v47  ;;  %v585_v12 = vld [vmem:[#allocation2 + $0x230] sm:$0xff]  ;;  %v586_v33 = vld [vmem:[#allocation2 + $0x238] sm:$0xff] }
 0x1c8   :  { %v442_v27 = vpop.permute.xlu1 %441  ;;  %v476_v26 = vpop.permute.xlu0 %475  ;;  %v609_v59 = vadd.f32 %v408_v50, %v366_v11  ;;  %v610_v39 = vadd.f32 %v409_v2, %v367_v15 }
 0x1c9   :  { %v447_v46 = vsel %vm443_vm5, %v434_v20, %v442_v27  ;;  %v451_v48 = vsel %vm443_vm5, %v442_v27, %v434_v20  ;;  %v308_v27 = vsel %vm300_vm2, %v2296_v57, %v2294_v25 }
 0x1ca   :  { %v467_v3 = vmul.f32 %v459_v22, %v447_v46  ;;  %v468_v25 = vmul.f32 %v460_v37, %v451_v48  ;;  %v634_v14 = vadd.f32 %v610_v39, %v602_v55 }
 0x1cc   :  { %v484_v0 = vpop.permute.xlu1 %483  ;;  %v518_v1 = vpop.permute.xlu0 %517 }
 0x1cd   :  { %v489_v7 = vsel %vm485_vm6, %v476_v26, %v484_v0  ;;  %v493_v29 = vsel %vm485_vm6, %v484_v0, %v476_v26  ;;  %v324_v26 = vmul.f32 %v316_v8, %v308_v27  ;;  %v656_v0 = vadd.f32 %v648_v13, %v592_v6 }
 0x1ce   :  { %v509_v57 = vmul.f32 %v501_v44, %v489_v7  ;;  %v510_v5 = vmul.f32 %v502_v53, %v493_v29 }
 0x1cf   :  { %v601_v47 = vadd.f32 %v324_v26, %v282_v60  ;;  %v66_v60 = vld [vmem:[%s3043_s3 + $0x10] sm:$0xff] }
 0x1d0   :  { %v526_v56 = vpop.permute.xlu1 %525 }
 0x1d1   :  { %v531_v24 = vsel %vm527_vm7, %v518_v1, %v526_v56  ;;  %v535_v61 = vsel %vm527_vm7, %v526_v56, %v518_v1  ;;  %v617_v1 = vadd.f32 %v467_v3, %v425_v62  ;;  %v633_v38 = vadd.f32 %v609_v59, %v601_v47 }
 0x1d2   :  { %v551_v20 = vmul.f32 %v543_v43, %v531_v24  ;;  %v552_v18 = vmul.f32 %v544_v54, %v535_v61  ;;  %v618_v43 = vadd.f32 %v468_v25, %v426_v21 }
 0x1d4   :  { %v625_v45 = vadd.f32 %v551_v20, %v509_v57  ;;  %v626_v51 = vadd.f32 %v552_v18, %v510_v5  ;;  %v560_v22 = vpop.permute.xlu1 %559 }
 0x1d6   :  { %v641_v10 = vadd.f32 %v625_v45, %v617_v1  ;;  %v642_v40 = vadd.f32 %v626_v51, %v618_v43  ;;  %v65_v45 = vld [vmem:[%s3043_s3 + $0x8] sm:$0xff]  ;;  %v67_v43 = vld [vmem:[%s3043_s3 + $0x18] sm:$0xff] }
 0x1d8   :  { %v649_v46 = vadd.f32 %v641_v10, %v633_v38  ;;  %v650_v48 = vadd.f32 %v642_v40, %v634_v14 }
 0x1d9   :  { %v2396_v54 = vpop.permute.xlu0 %671 }
 0x1da   :  { %v683_v56 = vadd.f32 %v2396_v54, %v655_v58  ;;  %v684_v32 = vadd.f32 %v2396_v54, %v656_v0  ;;  %v64_v0 = vld [vmem:[%s3043_s3] sm:$0xff] }
 0x1dc   :  { %v691_v16 = vmul.f32 0.16666667, %v683_v56  ;;  %v692_v13 = vmul.f32 0.16666667, %v684_v32 }
 0x1dd   :  { %v568_v24 = vpop.permute.xlu0 %567 }
 0x1de   :  { %v573_v62 = vsel %vm569_vm8, %v560_v22, %v568_v24  ;;  %v577_v21 = vsel %vm569_vm8, %v568_v24, %v560_v22  ;;  %v699_v61 = vadd.f32 0.5, %v691_v16  ;;  %v700_v37 = vadd.f32 0.5, %v692_v13 }
 0x1df   :  { %v593_v44 = vmul.f32 %v585_v12, %v573_v62  ;;  %v594_v53 = vmul.f32 %v586_v33, %v577_v21  ;;  %v3075_v62 = vlaneseq }
 0x1e0   :  { %v707_v7 = vmax.f32 %v699_v61, 0.0  ;;  %v708_v29 = vmax.f32 %v700_v37, 0.0  ;;  %v73_v61 = vld [vmem:[%s3046_s6] sm:$0x1] }
 0x1e1   :  { %v657_v49 = vadd.f32 %v649_v46, %v593_v44  ;;  %v658_v8 = vadd.f32 %v650_v48, %v594_v53  ;;  %v2404_v17 = vpop.permute.xlu1 %676  ;;  %v2437_v21 = vshrl.u32 %v3075_v62, 7  ;;  %v1735_v53 = vld [vmem:[%s3043_s3 + $0x38] sm:$0xff] }
 0x1e2   :  { %v715_v35 = vmin.f32 %v707_v7, 1.0  ;;  %v716_v27 = vmin.f32 %v708_v29, 1.0  ;;  %v1734_v7 = vld [vmem:[%s3043_s3 + $0x30] sm:$0xff] }
 0x1e3   :  { %v685_v20 = vadd.f32 %v2404_v17, %v657_v49  ;;  %v686_v18 = vadd.f32 %v2404_v17, %v658_v8  ;;  %v3064_v48 = vsub.s32 0, %v2437_v21  ;;  %v1733_v49 = vld [vmem:[%s3043_s3 + $0x28] sm:$0xff]  ;;  %v1732_v8 = vld [vmem:[%s3043_s3 + $0x20] sm:$0xff] }
 0x1e4   :  { %v2408_v36 = vmul.f32 %v715_v35, %v683_v56  ;;  %v2410_v30 = vmul.f32 %v716_v27, %v684_v32 }
 0x1e5   :  { %v693_v63 = vmul.f32 0.16666667, %v685_v20  ;;  %v694_v19 = vmul.f32 0.16666667, %v686_v18 }
 0x1e6   :  { %v733_v50 = vadd.f32 %v2410_v30, %v2408_v36 }
 0x1e7   :  { %v701_v2 = vadd.f32 0.5, %v693_v63  ;;  %v702_v4 = vadd.f32 0.5, %v694_v19 }
 0x1e8   :  { %734 = vadd.xlane.f32.xlu0 %v733_v50 }
 0x1e9   :  { %v709_v23 = vmax.f32 %v701_v2, 0.0  ;;  %v710_v3 = vmax.f32 %v702_v4, 0.0  ;;  %v1731_v4 = vld [vmem:[%s3045_s5 + $0x78] sm:$0xff] }
 0x1eb   :  { %v717_v25 = vmin.f32 %v709_v23, 1.0  ;;  %v718_v57 = vmin.f32 %v710_v3, 1.0  ;;  %v1730_v23 = vld [vmem:[%s3045_s5 + $0x70] sm:$0xff] }
 0x1ed   :  { %v2414_v5 = vmul.f32 %v717_v25, %v685_v20  ;;  %v2416_v31 = vmul.f32 %v718_v57, %v686_v18 }
 0x1ef   :  { %v736_v6 = vadd.f32 %v2416_v31, %v2414_v5 }
 0x1f1   :  { %737 = vadd.xlane.f32.xlu0 %v736_v6 }
 0x22f   :  { %v729_v26 = vpop.xlane.xlu0 %728 }
 0x230   :  { %v740_v51 = vmul.f32 0.00390625, %v729_v26  ;;  %v1729_v26 = vld [vmem:[%s3045_s5 + $0x68] sm:$0xff] }
 0x232   :  { %v744_v59 = vmul.f32 %v740_v51, %v64_v0 }
 0x233   :  { %v732_v9 = vpop.xlane.xlu1 %731 }
 0x234   :  { %v741_v11 = vmul.f32 0.00390625, %v732_v9  ;;  %v749_v32 = vsel %vm748_vm9, %v744_v59, 0.0  ;;  %v1728_v9 = vld [vmem:[%s3045_s5 + $0x60] sm:$0xff] }
 0x236   :  { %v745_v28 = vmul.f32 %v741_v11, %v65_v45 }
 0x238   :  { %v750_v1 = vsel %vm748_vm9, %v745_v28, 0.0 }
 0x239   :  { %v751_v10 = vadd.f32 %v750_v1, %v749_v32 }
 0x271   :  { %v735_v15 = vpop.xlane.xlu0 %734 }
 0x272   :  { %v742_v58 = vmul.f32 0.00390625, %v735_v15 }
 0x274   :  { %v746_v39 = vmul.f32 %v742_v58, %v66_v60 }
 0x276   :  { %v752_v47 = vsel %vm748_vm9, %v746_v39, 0.0 }
 0x277   :  { %v753_v12 = vadd.f32 %v752_v47, %v751_v10 }
 0x27a   :  { %v738_v56 = vpop.xlane.xlu0 %737 }
 0x27b   :  { %v743_v55 = vmul.f32 0.00390625, %v738_v56 }
 0x27d   :  { %v747_v40 = vmul.f32 %v743_v55, %v67_v43 }
 0x27f   :  { %v754_v33 = vsel %vm748_vm9, %v747_v40, 0.0 }
 0x280   :  { %v755_v16 = vadd.f32 %v754_v33, %v753_v12 }
 0x282   :  { %v756_v13 = vrot.slane %v755_v16, 4 }
 0x284   :  { %v757_v38 = vadd.f32 %v756_v13, %v755_v16 }
 0x286   :  { %v758_v14 = vrot.slane %v757_v38, 2 }
 0x288   :  { %v759_v22 = vadd.f32 %v758_v14, %v757_v38 }
 0x28a   :  { %v760_v24 = vrot.slane %v759_v22, 1 }
 0x28c   :  { %v761_v37 = vadd.f32 %v760_v24, %v759_v22 }
 0x28e   :  { %v762_v46 = vadd.f32 %v761_v37, %v73_v61 }
 0x290   :  { %v763_v44 = vmax.f32 %v762_v46, 0.0 }
 0x292   :  { %v767_v29 = vrot.slane %v763_v44, %v3064_v48  ;;  %v3076_v44 = vld [vmem:[#allocation14_spill] sm:$0xff] }
 0x294   :  { %v771_v35 = vmul.f32 %v1735_v53, %v767_v29  ;;  %v770_v27 = vmul.f32 %v1734_v7, %v767_v29  ;;  %v769_v63 = vmul.f32 %v1733_v49, %v767_v29  ;;  %v768_v19 = vmul.f32 %v1732_v8, %v767_v29  ;;  %v46_v7 = vld [vmem:[%s3044_s4 + $0x8] sm:$0xff]  ;;  %v1767_v29 = vld [vmem:[%s3041_s1] sm:$0xff]  ;;  %v1769_v8 = vld [vmem:[%s3041_s1 + $0x10] sm:$0xff] }
 0x295   :  { %v3077_v53 = vmov 0.0   ;;  %v1768_v49 = vld [vmem:[%s3041_s1 + $0x8] sm:$0xff] }
 0x296   :  { %v781_v20 = vsel %vm748_vm9, %v771_v35, 0.0  ;;  %v778_v18 = vsel %vm748_vm9, %v770_v27, 0.0  ;;  %v775_v50 = vsel %vm748_vm9, %v769_v63, 0.0  ;;  %v772_v2 = vsel %vm748_vm9, %v768_v19, 0.0  ;;  %v1770_v35 = vld [vmem:[%s3041_s1 + $0x18] sm:$0xff] }
 0x297   :  { %782 = vadd.xlane.f32.xlu1 %v781_v20  ;;  %779 = vadd.xlane.f32.xlu0 %v778_v18 }
 0x29b   :  { %776 = vadd.xlane.f32.xlu1 %v775_v50  ;;  %773 = vadd.xlane.f32.xlu0 %v772_v2  ;;  %v3082_v50 = vld [vmem:[#allocation8_spill] sm:$0xff] }
 0x320   :  { %v783_v3 = vpop.xlane.xlu1 %782  ;;  %v780_v25 = vpop.xlane.xlu0 %779 }
 0x321   :  { %v787_v57 = vadd.f32 %v1731_v4, %v783_v3  ;;  %v786_v6 = vadd.f32 %v1730_v23, %v780_v25 }
 0x323   :  { %v791_v11 = vmul.f32 0.16666667, %v787_v57  ;;  %v790_v15 = vmul.f32 0.16666667, %v786_v6  ;;  %v3083_v57 = vld [vmem:[#allocation9_spill] sm:$0xff] }
 0x324   :  { %v777_v45 = vpop.xlane.xlu1 %776  ;;  %v774_v51 = vpop.xlane.xlu0 %773 }
 0x325   :  { %v795_v58 = vadd.f32 0.5, %v791_v11  ;;  %v794_v0 = vadd.f32 0.5, %v790_v15  ;;  %v785_v60 = vadd.f32 %v1729_v26, %v777_v45  ;;  %v784_v28 = vadd.f32 %v1728_v9, %v774_v51 }
 0x327   :  { %v799_v59 = vmax.f32 %v795_v58, 0.0  ;;  %v798_v39 = vmax.f32 %v794_v0, 0.0  ;;  %v789_v1 = vmul.f32 0.16666667, %v785_v60  ;;  %v788_v43 = vmul.f32 0.16666667, %v784_v28 }
 0x329   :  { %v803_v56 = vmin.f32 %v799_v59, 1.0  ;;  %v802_v32 = vmin.f32 %v798_v39, 1.0  ;;  %v793_v47 = vadd.f32 0.5, %v789_v1  ;;  %v792_v55 = vadd.f32 0.5, %v788_v43 }
 0x32b   :  { %v797_v10 = vmax.f32 %v793_v47, 0.0  ;;  %821 = vperm.xlu1 %1766, %v803_v56   ;;  %816 = vperm.xlu0 %1765, %v802_v32   ;;  %v796_v12 = vmax.f32 %v792_v55, 0.0 }
 0x32d   :  { %v801_v40 = vmin.f32 %v797_v10, 1.0  ;;  %v800_v33 = vmin.f32 %v796_v12, 1.0 }
 0x32f   :  { %811 = vperm.xlu1 %1766, %v801_v40  }
 0x333   :  { %806 = vperm.xlu1 %1766, %v800_v33  }
 0x3a6   :  { %v822_v16 = vpop.permute.xlu1 %821  ;;  %v817_v13 = vpop.permute.xlu0 %816 }
 0x3a7   :  { %v831_v38 = vmul.f32 %v822_v16, %v2416_v31  ;;  %v830_v14 = vmul.f32 %v822_v16, %v2414_v5  ;;  %v829_v22 = vmul.f32 %v817_v13, %v2410_v30  ;;  %v828_v24 = vmul.f32 %v817_v13, %v2408_v36  ;;  %v45_v30 = vld [vmem:[%s3044_s4] sm:$0xff]  ;;  %v3084_v16 = vld [vmem:[#allocation10_spill] sm:$0xff] }
 0x3a8   :  { %v1742_v36 = vld [vmem:[%s3040_s0 + $0x20] sm:$0xff] }
 0x3a9   :  { %873 = vmatprep.subr.mxu1 %v831_v38 }
 0x3aa   :  { %874 = vmatpush1.msra.mxu1 %v830_v14  ;;  %v812_v62 = vpop.permute.xlu1 %811 }
 0x3ab   :  { %v826_v61 = vmul.f32 %v812_v62, %v2280_v34  ;;  %v827_v37 = vmul.f32 %v812_v62, %v2282_v52  ;;  %875 = vmatprep.subr.mxu1 %v829_v22  ;;  %v1745_v34 = vld [vmem:[%s3040_s0 + $0x38] sm:$0xff]  ;;  %v1744_v52 = vld [vmem:[%s3040_s0 + $0x30] sm:$0xff] }
 0x3ac   :  { %876 = vmatpush1.msra.mxu1 %v828_v24 }
 0x3ad   :  { %877 = vmatprep.subr.mxu1 %v827_v37 }
 0x3ae   :  { %v807_v46 = vpop.permute.xlu1 %806  ;;  %878 = vmatpush1.msra.mxu1 %v826_v61 }
 0x3af   :  { %v824_v31 = vmul.f32 %v807_v46, %v2274_v42  ;;  %v825_v5 = vmul.f32 %v807_v46, %v3076_v44  ;;  %v1743_v42 = vld [vmem:[%s3040_s0 + $0x28] sm:$0xff] }
 0x3b1   :  { %879 = vmatprep.subr.mxu1 %v825_v5 }
 0x3b2   :  { %880 = vmatpush1.msra.mxu1 %v824_v31 }
 0x3b3   :  { %1740 = vmatmul.mubr.msk.f32.vlgmr.msra.gmra.mxu1 %vm842_vm10, %v45_v30  ;;  %967 = vmatprep.subr.mxu1 %v1745_v34 }
 0x3b4   :  { %919 = vmatprep.mubr.f32.mxu1 %v3077_v53  ;;  %968 = vmatpush1.msra.mxu1 %v1744_v52  ;;  %v3085_v52 = vld [vmem:[#allocation11_spill] sm:$0xff] }
 0x3b5   :  { %969 = vmatprep.subr.mxu1 %v1743_v42 }
 0x3b6   :  { %970 = vmatpush1.msra.mxu1 %v1742_v36 }
 0x3b7   :  { %1741 = vmatmul.mubr.msk.f32.gmra.mxu1 %vm842_vm10, %v46_v7 }
 0x3b8   :  { %1003 = vmatprep.mubr.f32.mxu1 %v3077_v53 }
 0x3bb   :  { %1746 = vmatmul.mubr.msk.f32.vlgmr.msra.gmra.mxu1 %vm98_vm0, %v1767_v29 }
 0x3bc   :  { %1009 = vmatprep.mubr.f32.mxu1 %v3077_v53 }
 0x3bf   :  { %1747 = vmatmul.mubr.msk.f32.gmra.mxu1 %vm98_vm0, %v1768_v49 }
 0x3c0   :  { %1015 = vmatprep.mubr.f32.mxu1 %v3077_v53 }
 0x3c3   :  { %1748 = vmatmul.mubr.msk.f32.gmra.mxu1 %vm98_vm0, %v1769_v8 }
 0x3c4   :  { %1021 = vmatprep.mubr.f32.mxu1 %v3077_v53 }
 0x3c7   :  { %1749 = vmatmul.mubr.msk.f32.gmra.mxu1 %vm98_vm0, %v1770_v35 }
 0x473   :  { %v2522_v27 = vpop.f32.mrf.mxu1 }
 0x474   :  { %3078 = vst [vmem:[#allocation14_spill] sm:$0xff] %v2522_v27  ;;  %v1234_v27 = vld [vmem:[#allocation2 + $0x130] sm:$0xff] }
 0x475   :  { %v2524_v20 = vpop.f32.mrf.mxu1 }
 0x476   :  { %3079 = vst [vmem:[#allocation15_spill] sm:$0xff] %v2524_v20 }
 0x477   :  { %v2526_v18 = vpop.f32.mrf.mxu1 }
 0x478   :  { %3080 = vst [vmem:[#allocation16_spill] sm:$0xff] %v2526_v18 }
 0x479   :  { %v2528_v63 = vpop.f32.mrf.mxu1 }
 0x47a   :  { %3081 = vst [vmem:[#allocation17_spill] sm:$0xff] %v2528_v63 }
 0x47b   :  { %v1005_v19 = vpop.f32.mrf.mxu1 }
 0x47c   :  { %v1006_v2 = vadd.f32 %v1005_v19, %v3082_v50 }
 0x47d   :  { %v1007_v4 = vpop.f32.mrf.mxu1 }
 0x47e   :  { %v1028_v23 = vmul.f32 0.16666667, %v1006_v2  ;;  %v1008_v60 = vadd.f32 %v1007_v4, %v3082_v50 }
 0x47f   :  { %v1011_v3 = vpop.f32.mrf.mxu1 }
 0x480   :  { %v1036_v25 = vadd.f32 0.5, %v1028_v23  ;;  %v1012_v6 = vadd.f32 %v1011_v3, %v3083_v57  ;;  %v1029_v59 = vmul.f32 0.16666667, %v1008_v60 }
 0x481   :  { %v1013_v28 = vpop.f32.mrf.mxu1 }
 0x482   :  { %v1044_v26 = vmax.f32 %v1036_v25, 0.0  ;;  %v1030_v9 = vmul.f32 0.16666667, %v1012_v6  ;;  %v1014_v39 = vadd.f32 %v1013_v28, %v3083_v57  ;;  %v1037_v1 = vadd.f32 0.5, %v1029_v59 }
 0x483   :  { %v1017_v33 = vpop.f32.mrf.mxu1 }
 0x484   :  { %v1052_v11 = vmin.f32 %v1044_v26, 1.0  ;;  %v1038_v15 = vadd.f32 0.5, %v1030_v9  ;;  %v1031_v43 = vmul.f32 0.16666667, %v1014_v39  ;;  %v1045_v56 = vmax.f32 %v1037_v1, 0.0 }
 0x485   :  { %v1018_v13 = vadd.f32 %v1017_v33, %v3084_v16  ;;  %v1019_v38 = vpop.f32.mrf.mxu1 }
 0x486   :  { %v2532_v45 = vmul.f32 %v1052_v11, %v1006_v2  ;;  %v1046_v51 = vmax.f32 %v1038_v15, 0.0  ;;  %v1039_v32 = vadd.f32 0.5, %v1031_v43  ;;  %v1053_v47 = vmin.f32 %v1045_v56, 1.0 }
 0x487   :  { %v1032_v14 = vmul.f32 0.16666667, %v1018_v13  ;;  %v1020_v22 = vadd.f32 %v1019_v38, %v3084_v16  ;;  %v1023_v34 = vpop.f32.mrf.mxu1  ;;  %v1228_v16 = vld [vmem:[#allocation2 + $0x100] sm:$0xff] }
 0x488   :  { %v1054_v58 = vmin.f32 %v1046_v51, 1.0  ;;  %1068 = vrot.lane.b32.xlu0 %v2532_v45, %s1843_s13  ;;  %v1047_v55 = vmax.f32 %v1039_v32, 0.0  ;;  %v2568_v10 = vmul.f32 %v1053_v47, %v1008_v60  ;;  %v1024_v42 = vadd.f32 %v1023_v34, %v3085_v52  ;;  %v1212_v38 = vld [vmem:[#allocation2 + $0xc0] sm:$0xff] }
 0x489   :  { %v1040_v24 = vadd.f32 0.5, %v1032_v14  ;;  %v1033_v62 = vmul.f32 0.16666667, %v1020_v22  ;;  %v1025_v36 = vpop.f32.mrf.mxu1  ;;  %v1213_v14 = vld [vmem:[#allocation2 + $0xc8] sm:$0xff] }
 0x48a   :  { %v2536_v0 = vmul.f32 %v1054_v58, %v1012_v6  ;;  %v1055_v40 = vmin.f32 %v1047_v55, 1.0  ;;  %v1034_v7 = vmul.f32 0.16666667, %v1024_v42  ;;  %v1026_v29 = vadd.f32 %v1025_v36, %v3085_v52  ;;  %v1173_v36 = vld [vmem:[#allocation2 + $0x88] sm:$0xff] }
 0x48b   :  { %v1048_v61 = vmax.f32 %v1040_v24, 0.0  ;;  %v1041_v37 = vadd.f32 0.5, %v1033_v62  ;;  %v2704_v24 = vmul.f32 %v1228_v16, %v2532_v45  ;;  %v1092_v62 = vld [vmem:[#allocation2] sm:$0xff] }
 0x48c   :  { %1070 = vrot.lane.b32.xlu1 %v2536_v0, %s1843_s13  ;;  %1108 = vrot.lane.b32.xlu0 %v2532_v45, %s1840_s28  ;;  %v2574_v12 = vmul.f32 %v1055_v40, %v1014_v39  ;;  %v1042_v49 = vadd.f32 0.5, %v1034_v7  ;;  %v1035_v8 = vmul.f32 0.16666667, %v1026_v29 }
 0x48d   :  { %v1056_v46 = vmin.f32 %v1048_v61, 1.0  ;;  %v1049_v31 = vmax.f32 %v1041_v37, 0.0 }
 0x48e   :  { %v1050_v35 = vmax.f32 %v1042_v49, 0.0  ;;  %v1043_v19 = vadd.f32 0.5, %v1035_v8 }
 0x48f   :  { %v2606_v44 = vmul.f32 %v1056_v46, %v1018_v13  ;;  %v1057_v5 = vmin.f32 %v1049_v31, 1.0  ;;  %v1229_v13 = vld [vmem:[#allocation2 + $0x108] sm:$0xff]  ;;  %v1132_v46 = vld [vmem:[#allocation2 + $0x40] sm:$0xff] }
 0x490   :  { %1110 = vrot.lane.b32.xlu1 %v2536_v0, %s1840_s28  ;;  %1148 = vrot.lane.b32.xlu0 %v2532_v45, %s1844_s14  ;;  %v1058_v50 = vmin.f32 %v1050_v35, 1.0  ;;  %v1051_v2 = vmax.f32 %v1043_v19, 0.0  ;;  %v1133_v31 = vld [vmem:[#allocation2 + $0x48] sm:$0xff]  ;;  %v1134_v35 = vld [vmem:[#allocation2 + $0x50] sm:$0xff]  ;;  %v1135_v19 = vld [vmem:[#allocation2 + $0x58] sm:$0xff] }
 0x491   :  { %v2612_v30 = vmul.f32 %v1057_v5, %v1020_v22  ;;  %v2701_v22 = vmul.f32 %v1229_v13, %v2568_v10 }
 0x492   :  { %v2640_v4 = vmul.f32 %v1058_v50, %v1024_v42  ;;  %v1059_v23 = vmin.f32 %v1051_v2, 1.0  ;;  %v1093_v42 = vld [vmem:[#allocation2 + $0x8] sm:$0xff] }
 0x494   :  { %1150 = vrot.lane.b32.xlu1 %v2536_v0, %s1844_s14  ;;  %1188 = vrot.lane.b32.xlu0 %v2532_v45, %s1845_s15  ;;  %v2646_v3 = vmul.f32 %v1059_v23, %v1026_v29 }
 0x498   :  { %1190 = vrot.lane.b32.xlu1 %v2536_v0, %s1845_s15  ;;  %1244 = vrot.lane.b32.xlu0 %v2532_v45, %s1846_s16 }
 0x49c   :  { %1246 = vrot.lane.b32.xlu1 %v2536_v0, %s1846_s16  ;;  %1284 = vrot.lane.b32.xlu0 %v2532_v45, %s1847_s17 }
 0x4a0   :  { %1286 = vrot.lane.b32.xlu1 %v2536_v0, %s1847_s17  ;;  %1324 = vrot.lane.b32.xlu0 %v2532_v45, %s1848_s18 }
 0x4a4   :  { %1326 = vrot.lane.b32.xlu1 %v2536_v0, %s1848_s18  ;;  %1364 = vrot.lane.b32.xlu0 %v2532_v45, %s1849_s19  ;;  %v1172_v45 = vld [vmem:[#allocation2 + $0x80] sm:$0xff] }
 0x4a8   :  { %1366 = vrot.lane.b32.xlu1 %v2536_v0, %s1849_s19  ;;  %1076 = vrot.lane.b32.xlu0 %v2568_v10, %s1843_s13 }
 0x4ac   :  { %1078 = vrot.lane.b32.xlu1 %v2574_v12, %s1843_s13  ;;  %1116 = vrot.lane.b32.xlu0 %v2568_v10, %s1840_s28 }
 0x4b0   :  { %1118 = vrot.lane.b32.xlu1 %v2574_v12, %s1840_s28  ;;  %1156 = vrot.lane.b32.xlu0 %v2568_v10, %s1844_s14 }
 0x4b4   :  { %1158 = vrot.lane.b32.xlu1 %v2574_v12, %s1844_s14  ;;  %1196 = vrot.lane.b32.xlu0 %v2568_v10, %s1845_s15 }
 0x4b8   :  { %1198 = vrot.lane.b32.xlu1 %v2574_v12, %s1845_s15  ;;  %1252 = vrot.lane.b32.xlu0 %v2568_v10, %s1846_s16 }
 0x4bc   :  { %1254 = vrot.lane.b32.xlu1 %v2574_v12, %s1846_s16  ;;  %1292 = vrot.lane.b32.xlu0 %v2568_v10, %s1847_s17 }
 0x4c0   :  { %1294 = vrot.lane.b32.xlu1 %v2574_v12, %s1847_s17  ;;  %1332 = vrot.lane.b32.xlu0 %v2568_v10, %s1848_s18 }
 0x4c4   :  { %1334 = vrot.lane.b32.xlu1 %v2574_v12, %s1848_s18  ;;  %1372 = vrot.lane.b32.xlu0 %v2568_v10, %s1849_s19 }
 0x4c8   :  { %1374 = vrot.lane.b32.xlu1 %v2574_v12, %s1849_s19  ;;  %1072 = vrot.lane.b32.xlu0 %v2606_v44, %s1843_s13 }
 0x4cc   :  { %1080 = vrot.lane.b32.xlu1 %v2612_v30, %s1843_s13  ;;  %1112 = vrot.lane.b32.xlu0 %v2606_v44, %s1840_s28 }
 0x4d0   :  { %1120 = vrot.lane.b32.xlu1 %v2612_v30, %s1840_s28  ;;  %1152 = vrot.lane.b32.xlu0 %v2606_v44, %s1844_s14 }
 0x4d4   :  { %1160 = vrot.lane.b32.xlu1 %v2612_v30, %s1844_s14  ;;  %1192 = vrot.lane.b32.xlu0 %v2606_v44, %s1845_s15 }
 0x4d8   :  { %1200 = vrot.lane.b32.xlu1 %v2612_v30, %s1845_s15  ;;  %1248 = vrot.lane.b32.xlu0 %v2606_v44, %s1846_s16 }
 0x4dc   :  { %1256 = vrot.lane.b32.xlu1 %v2612_v30, %s1846_s16  ;;  %1288 = vrot.lane.b32.xlu0 %v2606_v44, %s1847_s17 }
 0x4e0   :  { %1296 = vrot.lane.b32.xlu1 %v2612_v30, %s1847_s17  ;;  %1328 = vrot.lane.b32.xlu0 %v2606_v44, %s1848_s18 }
 0x4e4   :  { %1336 = vrot.lane.b32.xlu1 %v2612_v30, %s1848_s18  ;;  %1074 = vrot.lane.b32.xlu0 %v2640_v4, %s1843_s13 }
 0x4e8   :  { %1082 = vrot.lane.b32.xlu1 %v2646_v3, %s1843_s13  ;;  %1114 = vrot.lane.b32.xlu0 %v2640_v4, %s1840_s28 }
 0x4ec   :  { %1122 = vrot.lane.b32.xlu1 %v2646_v3, %s1840_s28  ;;  %1154 = vrot.lane.b32.xlu0 %v2640_v4, %s1844_s14 }
 0x4f0   :  { %1162 = vrot.lane.b32.xlu1 %v2646_v3, %s1844_s14  ;;  %1194 = vrot.lane.b32.xlu0 %v2640_v4, %s1845_s15 }
 0x4f4   :  { %1202 = vrot.lane.b32.xlu1 %v2646_v3, %s1845_s15  ;;  %1250 = vrot.lane.b32.xlu0 %v2640_v4, %s1846_s16 }
 0x4f8   :  { %1258 = vrot.lane.b32.xlu1 %v2646_v3, %s1846_s16  ;;  %1290 = vrot.lane.b32.xlu0 %v2640_v4, %s1847_s17 }
 0x4fa   :  { %v1069_v25 = vpop.permute.xlu0 %1068 }
 0x4fc   :  { %1298 = vrot.lane.b32.xlu1 %v2646_v3, %s1847_s17  ;;  %1330 = vrot.lane.b32.xlu0 %v2640_v4, %s1848_s18 }
 0x4fe   :  { %v1071_v57 = vpop.permute.xlu1 %1070  ;;  %v1109_v6 = vpop.permute.xlu0 %1108 }
 0x500   :  { %1338 = vrot.lane.b32.xlu1 %v2646_v3, %s1848_s18  ;;  %1368 = vrot.lane.b32.xlu0 %v2606_v44, %s1849_s19 }
 0x502   :  { %v1111_v26 = vpop.permute.xlu1 %1110  ;;  %v1149_v9 = vpop.permute.xlu0 %1148 }
 0x504   :  { %1376 = vrot.lane.b32.xlu1 %v2612_v30, %s1849_s19  ;;  %1370 = vrot.lane.b32.xlu0 %v2640_v4, %s1849_s19 }
 0x506   :  { %v2680_v11 = vpop.permute.xlu1 %1150  ;;  %v1189_v15 = vpop.permute.xlu0 %1188 }
 0x508   :  { %1378 = vrot.lane.b32.xlu1 %v2646_v3, %s1849_s19 }
 0x50a   :  { %v1191_v51 = vpop.permute.xlu1 %1190  ;;  %v2684_v58 = vpop.permute.xlu0 %1244 }
 0x50e   :  { %v2686_v60 = vpop.permute.xlu1 %1246  ;;  %v2688_v28 = vpop.permute.xlu0 %1284 }
 0x512   :  { %v2690_v59 = vpop.permute.xlu1 %1286  ;;  %v2692_v39 = vpop.permute.xlu0 %1324 }
 0x516   :  { %v2694_v1 = vpop.permute.xlu1 %1326  ;;  %v2696_v43 = vpop.permute.xlu0 %1364 }
 0x51a   :  { %v2698_v56 = vpop.permute.xlu1 %1366  ;;  %v1077_v32 = vpop.permute.xlu0 %1076 }
 0x51b   :  { %v1084_v61 = vsel %vm259_vm1, %v1069_v25, %v1077_v32  ;;  %v1088_v37 = vsel %vm259_vm1, %v1077_v32, %v1069_v25  ;;  %v1095_v32 = vld [vmem:[#allocation2 + $0x18] sm:$0xff] }
 0x51c   :  { %v1100_v16 = vmul.f32 %v1092_v62, %v1088_v37  ;;  %v1101_v13 = vmul.f32 %v1093_v42, %v1084_v61  ;;  %v1230_v62 = vld [vmem:[#allocation2 + $0x110] sm:$0xff]  ;;  %v1231_v61 = vld [vmem:[#allocation2 + $0x118] sm:$0xff] }
 0x51e   :  { %v1079_v47 = vpop.permute.xlu1 %1078  ;;  %v1117_v55 = vpop.permute.xlu0 %1116 }
 0x51f   :  { %v1124_v5 = vsel %vm300_vm2, %v1109_v6, %v1117_v55  ;;  %v1128_v34 = vsel %vm300_vm2, %v1117_v55, %v1109_v6  ;;  %v1094_v6 = vld [vmem:[#allocation2 + $0x10] sm:$0xff]  ;;  %v1089_v55 = vsel %vm259_vm1, %v1079_v47, %v1071_v57 }
 0x522   :  { %v1119_v40 = vpop.permute.xlu1 %1118  ;;  %v1157_v33 = vpop.permute.xlu0 %1156 }
 0x523   :  { %v1164_v7 = vsel %vm342_vm3, %v1149_v9, %v1157_v33  ;;  %v1168_v29 = vsel %vm342_vm3, %v1157_v33, %v1149_v9  ;;  %v1125_v50 = vsel %vm300_vm2, %v1111_v26, %v1119_v40  ;;  %v1129_v2 = vsel %vm300_vm2, %v1119_v40, %v1111_v26  ;;  %v1214_v40 = vld [vmem:[#allocation2 + $0xd0] sm:$0xff] }
 0x524   :  { %v1085_v9 = vsel %vm259_vm1, %v1071_v57, %v1079_v47  ;;  %v1140_v33 = vmul.f32 %v1132_v46, %v1128_v34  ;;  %v1181_v48 = vmul.f32 %v1173_v36, %v1164_v7  ;;  %v1142_v18 = vmul.f32 %v1134_v35, %v1129_v2  ;;  %v1175_v34 = vld [vmem:[#allocation2 + $0x98] sm:$0xff]  ;;  %v1269_v7 = vld [vmem:[#allocation2 + $0x148] sm:$0xff] }
 0x525   :  { %v1143_v26 = vmul.f32 %v1135_v19, %v1125_v50  ;;  %v1103_v57 = vmul.f32 %v1095_v32, %v1085_v9  ;;  %v1308_v9 = vld [vmem:[#allocation2 + $0x180] sm:$0xff] }
 0x526   :  { %v1159_v10 = vpop.permute.xlu1 %1158  ;;  %v1197_v52 = vpop.permute.xlu0 %1196  ;;  %v1404_v37 = vadd.f32 %v1140_v33, %v1100_v16 }
 0x527   :  { %v1204_v49 = vsel %vm384_vm4, %v1189_v15, %v1197_v52  ;;  %v1208_v8 = vsel %vm384_vm4, %v1197_v52, %v1189_v15  ;;  %v1141_v15 = vmul.f32 %v1133_v31, %v1124_v5  ;;  %v1180_v52 = vmul.f32 %v1172_v45, %v1168_v29  ;;  %v1174_v5 = vld [vmem:[#allocation2 + $0x90] sm:$0xff] }
 0x528   :  { %v1220_v23 = vmul.f32 %v1212_v38, %v1208_v8  ;;  %v1221_v25 = vmul.f32 %v1213_v14, %v1204_v49  ;;  %v1215_v38 = vld [vmem:[#allocation2 + $0xd8] sm:$0xff]  ;;  %v1102_v8 = vmul.f32 %v1094_v6, %v1089_v55  ;;  %v1165_v42 = vsel %vm342_vm3, %v2680_v11, %v1159_v10 }
 0x529   :  { %v1405_v31 = vadd.f32 %v1141_v15, %v1101_v13  ;;  %v1169_v45 = vsel %vm342_vm3, %v1159_v10, %v2680_v11  ;;  %v2748_v2 = vadd.f32 %v1143_v26, %v1103_v57  ;;  %v1239_v11 = vmul.f32 %v1231_v61, %v2574_v12  ;;  %v1309_v15 = vld [vmem:[#allocation2 + $0x188] sm:$0xff]  ;;  %v1270_v13 = vld [vmem:[#allocation2 + $0x150] sm:$0xff] }
 0x52a   :  { %v1199_v53 = vpop.permute.xlu1 %1198  ;;  %v1253_v63 = vpop.permute.xlu0 %1252  ;;  %v1412_v47 = vadd.f32 %v1220_v23, %v1180_v52  ;;  %v1413_v46 = vadd.f32 %v1221_v25, %v1181_v48  ;;  %v2746_v50 = vadd.f32 %v1142_v18, %v1102_v8  ;;  %v1238_v10 = vmul.f32 %v1230_v62, %v2536_v0  ;;  %v1349_v12 = vld [vmem:[#allocation2 + $0x1c8] sm:$0xff]  ;;  %v1271_v52 = vld [vmem:[#allocation2 + $0x158] sm:$0xff] }
 0x52b   :  { %v1205_v14 = vsel %vm384_vm4, %v1191_v51, %v1199_v53  ;;  %v1209_v49 = vsel %vm384_vm4, %v1199_v53, %v1191_v51  ;;  %v1268_v51 = vld [vmem:[#allocation2 + $0x140] sm:$0xff]  ;;  %v1260_v48 = vsel %vm443_vm5, %v2684_v58, %v1253_v63  ;;  %v1264_v29 = vsel %vm443_vm5, %v1253_v63, %v2684_v58  ;;  %v1311_v8 = vld [vmem:[#allocation2 + $0x198] sm:$0xff] }
 0x52c   :  { %v1222_v36 = vmul.f32 %v1214_v40, %v1209_v49  ;;  %v1223_v53 = vmul.f32 %v1215_v38, %v1205_v14  ;;  %v1182_v23 = vmul.f32 %v1174_v5, %v1169_v45  ;;  %v1183_v25 = vmul.f32 %v1175_v34, %v1165_v42  ;;  %v1348_v58 = vld [vmem:[#allocation2 + $0x1c0] sm:$0xff]  ;;  %v1310_v49 = vld [vmem:[#allocation2 + $0x190] sm:$0xff] }
 0x52d   :  { %v1436_v6 = vadd.f32 %v1412_v47, %v1404_v37  ;;  %v1437_v32 = vadd.f32 %v1413_v46, %v1405_v31  ;;  %v1276_v55 = vmul.f32 %v1268_v51, %v1260_v48  ;;  %v1277_v33 = vmul.f32 %v1269_v7, %v1264_v29  ;;  %v1350_v45 = vld [vmem:[#allocation2 + $0x1d0] sm:$0xff]  ;;  %v1388_v29 = vld [vmem:[#allocation2 + $0x200] sm:$0xff] }
 0x52e   :  { %v1255_v35 = vpop.permute.xlu1 %1254  ;;  %v1293_v19 = vpop.permute.xlu0 %1292  ;;  %v1414_v16 = vadd.f32 %v1222_v36, %v1182_v23  ;;  %v1415_v0 = vadd.f32 %v1223_v53, %v1183_v25 }
 0x52f   :  { %v1300_v63 = vsel %vm485_vm6, %v2688_v28, %v1293_v19  ;;  %v1304_v18 = vsel %vm485_vm6, %v1293_v19, %v2688_v28  ;;  %v1261_v26 = vsel %vm443_vm5, %v2686_v60, %v1255_v35  ;;  %v1265_v40 = vsel %vm443_vm5, %v1255_v35, %v2686_v60  ;;  %v1389_v35 = vld [vmem:[#allocation2 + $0x208] sm:$0xff] }
 0x530   :  { %v1316_v46 = vmul.f32 %v1308_v9, %v1300_v63  ;;  %v1317_v62 = vmul.f32 %v1309_v15, %v1304_v18  ;;  %v1420_v31 = vadd.f32 %v1276_v55, %v2704_v24  ;;  %v1421_v5 = vadd.f32 %v1277_v33, %v2701_v22 }
 0x531   :  { %v1278_v34 = vmul.f32 %v1270_v13, %v1261_v26  ;;  %v1279_v42 = vmul.f32 %v1271_v52, %v1265_v40  ;;  %v1390_v26 = vld [vmem:[#allocation2 + $0x210] sm:$0xff]  ;;  %v1391_v40 = vld [vmem:[#allocation2 + $0x218] sm:$0xff] }
 0x532   :  { %v1295_v38 = vpop.permute.xlu1 %1294  ;;  %v1333_v14 = vpop.permute.xlu0 %1332 }
 0x533   :  { %v1301_v28 = vsel %vm485_vm6, %v2690_v59, %v1295_v38  ;;  %v1305_v57 = vsel %vm485_vm6, %v1295_v38, %v2690_v59  ;;  %v1340_v47 = vsel %vm527_vm7, %v2692_v39, %v1333_v14  ;;  %v1344_v60 = vsel %vm527_vm7, %v1333_v14, %v2692_v39  ;;  %v1351_v59 = vld [vmem:[#allocation2 + $0x1d8] sm:$0xff] }
 0x534   :  { %v1356_v61 = vmul.f32 %v1348_v58, %v1340_v47  ;;  %v1357_v37 = vmul.f32 %v1349_v12, %v1344_v60  ;;  %v1318_v36 = vmul.f32 %v1310_v49, %v1301_v28  ;;  %v1319_v53 = vmul.f32 %v1311_v8, %v1305_v57  ;;  %v3086_v60 = vld [vmem:[#allocation12_spill] sm:$0xff] }
 0x535   :  { %v1422_v15 = vadd.f32 %v1278_v34, %v1238_v10  ;;  %v1423_v63 = vadd.f32 %v1279_v42, %v1239_v11  ;;  %v1438_v49 = vadd.f32 %v1414_v16, %v2746_v50 }
 0x536   :  { %v1428_v51 = vadd.f32 %v1356_v61, %v1316_v46  ;;  %v1429_v7 = vadd.f32 %v1357_v37, %v1317_v62  ;;  %v1335_v48 = vpop.permute.xlu1 %1334  ;;  %v1373_v39 = vpop.permute.xlu0 %1372 }
 0x537   :  { %v1341_v19 = vsel %vm527_vm7, %v2694_v1, %v1335_v48  ;;  %v1345_v22 = vsel %vm527_vm7, %v1335_v48, %v2694_v1  ;;  %v1380_v24 = vsel %vm569_vm8, %v2696_v43, %v1373_v39  ;;  %v1384_v23 = vsel %vm569_vm8, %v1373_v39, %v2696_v43 }
 0x538   :  { %v1444_v25 = vadd.f32 %v1428_v51, %v1420_v31  ;;  %v1445_v9 = vadd.f32 %v1429_v7, %v1421_v5  ;;  %v1358_v55 = vmul.f32 %v1350_v45, %v1341_v19  ;;  %v1359_v33 = vmul.f32 %v1351_v59, %v1345_v22 }
 0x539   :  { %v1396_v18 = vmul.f32 %v1388_v29, %v1380_v24  ;;  %v1397_v58 = vmul.f32 %v1389_v35, %v1384_v23  ;;  %v1439_v43 = vadd.f32 %v1415_v0, %v2748_v2 }
 0x53a   :  { %v1430_v12 = vadd.f32 %v1358_v55, %v1318_v36  ;;  %v1431_v13 = vadd.f32 %v1359_v33, %v1319_v53  ;;  %v1453_v52 = vadd.f32 %v1445_v9, %v1437_v32  ;;  %v1452_v1 = vadd.f32 %v1444_v25, %v1436_v6  ;;  %v1375_v38 = vpop.permute.xlu1 %1374  ;;  %v2790_v14 = vpop.permute.xlu0 %1072 }
 0x53b   :  { %v1381_v10 = vsel %vm569_vm8, %v2698_v56, %v1375_v38  ;;  %v1385_v11 = vsel %vm569_vm8, %v1375_v38, %v2698_v56  ;;  %v3087_v56 = vld [vmem:[#allocation13_spill] sm:$0xff] }
 0x53c   :  { %v1446_v8 = vadd.f32 %v1430_v12, %v1422_v15  ;;  %v1447_v32 = vadd.f32 %v1431_v13, %v1423_v63  ;;  %v1460_v6 = vadd.f32 %v1452_v1, %v1396_v18  ;;  %v1461_v28 = vadd.f32 %v1453_v52, %v1397_v58 }
 0x53d   :  { %v1398_v57 = vmul.f32 %v1390_v26, %v1381_v10  ;;  %v1399_v47 = vmul.f32 %v1391_v40, %v1385_v11 }
 0x53e   :  { %v1468_v46 = vadd.f32 %v1460_v6, %v3086_v60  ;;  %v1469_v50 = vadd.f32 %v1461_v28, %v3086_v60  ;;  %v1455_v16 = vadd.f32 %v1447_v32, %v1439_v43  ;;  %v1454_v2 = vadd.f32 %v1446_v8, %v1438_v49  ;;  %v2802_v0 = vpop.permute.xlu1 %1080  ;;  %v1113_v62 = vpop.permute.xlu0 %1112  ;;  %v1216_v28 = vld [vmem:[#allocation2 + $0xe0] sm:$0xff] }
 0x540   :  { %v1476_v61 = vmul.f32 0.16666667, %v1468_v46  ;;  %v1477_v37 = vmul.f32 0.16666667, %v1469_v50  ;;  %v1462_v31 = vadd.f32 %v1454_v2, %v1398_v57  ;;  %v1463_v5 = vadd.f32 %v1455_v16, %v1399_v47  ;;  %v1217_v57 = vld [vmem:[#allocation2 + $0xe8] sm:$0xff] }
 0x541   :  { %v1137_v2 = vld [vmem:[#allocation2 + $0x68] sm:$0xff] }
 0x542   :  { %v1470_v34 = vadd.f32 %v1462_v31, %v3087_v56  ;;  %v1471_v42 = vadd.f32 %v1463_v5, %v3087_v56  ;;  %v1121_v45 = vpop.permute.xlu1 %1120  ;;  %v1153_v59 = vpop.permute.xlu0 %1152  ;;  %v1484_v36 = vadd.f32 0.5, %v1476_v61  ;;  %v1485_v53 = vadd.f32 0.5, %v1477_v37  ;;  %v1352_v31 = vld [vmem:[#allocation2 + $0x1e0] sm:$0xff]  ;;  %v1353_v5 = vld [vmem:[#allocation2 + $0x1e8] sm:$0xff] }
 0x543   :  { %v1126_v61 = vsel %vm300_vm2, %v1113_v62, %v1121_v45  ;;  %v1130_v37 = vsel %vm300_vm2, %v1121_v45, %v1113_v62  ;;  %v1273_v62 = vld [vmem:[#allocation2 + $0x168] sm:$0xff] }
 0x544   :  { %v1478_v51 = vmul.f32 0.16666667, %v1470_v34  ;;  %v1479_v7 = vmul.f32 0.16666667, %v1471_v42  ;;  %v1492_v48 = vmax.f32 %v1484_v36, 0.0  ;;  %v1493_v29 = vmax.f32 %v1485_v53, 0.0 }
 0x545   :  { %v1177_v36 = vld [vmem:[#allocation2 + $0xa8] sm:$0xff] }
 0x546   :  { %v1161_v35 = vpop.permute.xlu1 %1160  ;;  %v1193_v39 = vpop.permute.xlu0 %1192  ;;  %v1486_v19 = vadd.f32 0.5, %v1478_v51  ;;  %v1487_v22 = vadd.f32 0.5, %v1479_v7  ;;  %v1500_v24 = vmin.f32 %v1492_v48, 1.0  ;;  %v1501_v23 = vmin.f32 %v1493_v29, 1.0  ;;  %v1272_v29 = vld [vmem:[#allocation2 + $0x160] sm:$0xff] }
 0x547   :  { %v1166_v53 = vsel %vm342_vm3, %v1153_v59, %v1161_v35  ;;  %v1170_v51 = vsel %vm342_vm3, %v1161_v35, %v1153_v59  ;;  %v1097_v59 = vld [vmem:[#allocation2 + $0x28] sm:$0xff]  ;;  %v1086_v35 = vsel %vm259_vm1, %v2790_v14, %v2802_v0 }
 0x548   :  { %v1494_v25 = vmax.f32 %v1486_v19, 0.0  ;;  %v1495_v9 = vmax.f32 %v1487_v22, 0.0  ;;  %v2806_v55 = vmul.f32 %v1500_v24, %v1468_v46  ;;  %v2808_v33 = vmul.f32 %v1501_v23, %v1469_v50  ;;  %v1136_v46 = vld [vmem:[#allocation2 + $0x60] sm:$0xff]  ;;  %v1313_v22 = vld [vmem:[#allocation2 + $0x1a8] sm:$0xff] }
 0x549   :  { %v1312_v19 = vld [vmem:[#allocation2 + $0x1a0] sm:$0xff] }
 0x54a   :  { %3088 = vst [vmem:[#allocation8_spill] sm:$0xff] %v2806_v55  ;;  %3089 = vst [vmem:[#allocation9_spill] sm:$0xff] %v2808_v33  ;;  %v1201_v15 = vpop.permute.xlu1 %1200  ;;  %v1249_v63 = vpop.permute.xlu0 %1248  ;;  %v1502_v18 = vmin.f32 %v1494_v25, 1.0  ;;  %v1503_v58 = vmin.f32 %v1495_v9, 1.0  ;;  %v1516_v12 = vadd.f32 %v2808_v33, %v2806_v55  ;;  %v1096_v25 = vld [vmem:[#allocation2 + $0x20] sm:$0xff]  ;;  %v1090_v9 = vsel %vm259_vm1, %v2802_v0, %v2790_v14  ;;  %v1235_v14 = vld [vmem:[#allocation2 + $0x138] sm:$0xff] }
 0x54b   :  { %v1206_v47 = vsel %vm384_vm4, %v1193_v39, %v1201_v15  ;;  %v1210_v60 = vsel %vm384_vm4, %v1201_v15, %v1193_v39  ;;  %v1105_v33 = vmul.f32 %v1097_v59, %v1086_v35  ;;  %v1178_v35 = vld [vmem:[#allocation2 + $0xb0] sm:$0xff] }
 0x54c   :  { %v2812_v13 = vmul.f32 %v1502_v18, %v1470_v34  ;;  %v2814_v52 = vmul.f32 %v1503_v58, %v1471_v42  ;;  %1517 = vadd.xlane.f32.xlu0 %v1516_v12  ;;  %v1176_v42 = vld [vmem:[#allocation2 + $0xa0] sm:$0xff]  ;;  %v1224_v7 = vmul.f32 %v1216_v28, %v1210_v60  ;;  %v1225_v48 = vmul.f32 %v1217_v57, %v1206_v47 }
 0x54d   :  { %v1144_v12 = vmul.f32 %v1136_v46, %v1130_v37  ;;  %v1104_v60 = vmul.f32 %v1096_v25, %v1090_v9  ;;  %v1179_v9 = vld [vmem:[#allocation2 + $0xb8] sm:$0xff] }
 0x54e   :  { %v1257_v1 = vpop.permute.xlu1 %1256  ;;  %v1289_v26 = vpop.permute.xlu0 %1288  ;;  %v1519_v40 = vadd.f32 %v2814_v52, %v2812_v13 }
 0x54f   :  { %v1262_v45 = vsel %vm443_vm5, %v1249_v63, %v1257_v1  ;;  %v1266_v39 = vsel %vm443_vm5, %v1257_v1, %v1249_v63  ;;  %v1145_v1 = vmul.f32 %v1137_v2, %v1126_v61 }
 0x550   :  { %1520 = vadd.xlane.f32.xlu1 %v1519_v40  ;;  %v1184_v40 = vmul.f32 %v1176_v42, %v1170_v51  ;;  %v1281_v28 = vmul.f32 %v1273_v62, %v1266_v39 }
 0x552   :  { %v1297_v38 = vpop.permute.xlu1 %1296  ;;  %v1329_v49 = vpop.permute.xlu0 %1328  ;;  %v1416_v55 = vadd.f32 %v1224_v7, %v1184_v40  ;;  %v1354_v40 = vld [vmem:[#allocation2 + $0x1f0] sm:$0xff] }
 0x553   :  { %v1302_v24 = vsel %vm485_vm6, %v1289_v26, %v1297_v38  ;;  %v1306_v23 = vsel %vm485_vm6, %v1297_v38, %v1289_v26  ;;  %v1185_v26 = vmul.f32 %v1177_v36, %v1166_v53  ;;  %v1232_v38 = vld [vmem:[#allocation2 + $0x120] sm:$0xff]  ;;  %v1242_v36 = vmul.f32 %v1234_v27, %v2640_v4  ;;  %v1218_v27 = vld [vmem:[#allocation2 + $0xf0] sm:$0xff]  ;;  %v1219_v4 = vld [vmem:[#allocation2 + $0xf8] sm:$0xff] }
 0x554   :  { %v1320_v57 = vmul.f32 %v1312_v19, %v1302_v24  ;;  %v1321_v47 = vmul.f32 %v1313_v22, %v1306_v23  ;;  %v1240_v0 = vmul.f32 %v1232_v38, %v2606_v44  ;;  %v1243_v53 = vmul.f32 %v1235_v14, %v2646_v3  ;;  %v1139_v19 = vld [vmem:[#allocation2 + $0x78] sm:$0xff]  ;;  %v1274_v22 = vld [vmem:[#allocation2 + $0x170] sm:$0xff] }
 0x555   :  { %v1417_v20 = vadd.f32 %v1225_v48, %v1185_v26  ;;  %v1098_v48 = vld [vmem:[#allocation2 + $0x30] sm:$0xff]  ;;  %v1275_v24 = vld [vmem:[#allocation2 + $0x178] sm:$0xff] }
 0x556   :  { %v1337_v43 = vpop.permute.xlu1 %1336  ;;  %v2818_v10 = vpop.permute.xlu0 %1074  ;;  %v1355_v26 = vld [vmem:[#allocation2 + $0x1f8] sm:$0xff] }
 0x557   :  { %v1342_v56 = vsel %vm527_vm7, %v1329_v49, %v1337_v43  ;;  %v1346_v34 = vsel %vm527_vm7, %v1337_v43, %v1329_v49  ;;  %v1233_v49 = vld [vmem:[#allocation2 + $0x128] sm:$0xff]  ;;  %v1280_v43 = vmul.f32 %v1272_v29, %v1262_v45  ;;  %v1099_v29 = vld [vmem:[#allocation2 + $0x38] sm:$0xff]  ;;  %v1138_v45 = vld [vmem:[#allocation2 + $0x70] sm:$0xff] }
 0x558   :  { %v1360_v15 = vmul.f32 %v1352_v31, %v1342_v56  ;;  %v1361_v63 = vmul.f32 %v1353_v5, %v1346_v34  ;;  %v1241_v31 = vmul.f32 %v1233_v49, %v2612_v30  ;;  %v1408_v5 = vadd.f32 %v1144_v12, %v1104_v60  ;;  %v1315_v12 = vld [vmem:[#allocation2 + $0x1b8] sm:$0xff] }
 0x559   :  { %v1409_v56 = vadd.f32 %v1145_v1, %v1105_v33  ;;  %v1424_v34 = vadd.f32 %v1280_v43, %v1240_v0 }
 0x55a   :  { %v2820_v11 = vpop.permute.xlu1 %1082  ;;  %v2822_v8 = vpop.permute.xlu0 %1114  ;;  %v1432_v46 = vadd.f32 %v1360_v15, %v1320_v57  ;;  %v1433_v2 = vadd.f32 %v1361_v63, %v1321_v47  ;;  %v1425_v42 = vadd.f32 %v1281_v28, %v1241_v31  ;;  %v1440_v51 = vadd.f32 %v1416_v55, %v1408_v5  ;;  %v1392_v5 = vld [vmem:[#allocation2 + $0x220] sm:$0xff] }
 0x55b   :  { %v1441_v7 = vadd.f32 %v1417_v20, %v1409_v56  ;;  %v1087_v44 = vsel %vm259_vm1, %v2818_v10, %v2820_v11  ;;  %v1091_v30 = vsel %vm259_vm1, %v2820_v11, %v2818_v10  ;;  %v1393_v56 = vld [vmem:[#allocation2 + $0x228] sm:$0xff] }
 0x55c   :  { %v1448_v33 = vadd.f32 %v1432_v46, %v1424_v34  ;;  %v1449_v62 = vadd.f32 %v1433_v2, %v1425_v42  ;;  %v1106_v25 = vmul.f32 %v1098_v48, %v1091_v30  ;;  %v1107_v59 = vmul.f32 %v1099_v29, %v1087_v44 }
 0x55e   :  { %v2824_v32 = vpop.permute.xlu1 %1122  ;;  %v2826_v6 = vpop.permute.xlu0 %1154  ;;  %v1456_v34 = vadd.f32 %v1448_v33, %v1440_v51  ;;  %v1457_v42 = vadd.f32 %v1449_v62, %v1441_v7  ;;  %v1394_v7 = vld [vmem:[#allocation2 + $0x230] sm:$0xff] }
 0x55f   :  { %v1127_v10 = vsel %vm300_vm2, %v2822_v8, %v2824_v32  ;;  %v1131_v11 = vsel %vm300_vm2, %v2824_v32, %v2822_v8  ;;  %v1314_v32 = vld [vmem:[#allocation2 + $0x1b0] sm:$0xff] }
 0x560   :  { %v1146_v38 = vmul.f32 %v1138_v45, %v1131_v11  ;;  %v1147_v49 = vmul.f32 %v1139_v19, %v1127_v10 }
 0x562   :  { %v2832_v50 = vpop.permute.xlu1 %1162  ;;  %v2834_v16 = vpop.permute.xlu0 %1194 }
 0x563   :  { %v1167_v15 = vsel %vm342_vm3, %v2826_v6, %v2832_v50  ;;  %v1171_v8 = vsel %vm342_vm3, %v2832_v50, %v2826_v6 }
 0x564   :  { %v1186_v47 = vmul.f32 %v1178_v35, %v1171_v8  ;;  %v1187_v60 = vmul.f32 %v1179_v9, %v1167_v15 }
 0x566   :  { %v1203_v18 = vpop.permute.xlu1 %1202  ;;  %v1251_v58 = vpop.permute.xlu0 %1250 }
 0x567   :  { %v1207_v20 = vsel %vm384_vm4, %v2834_v16, %v1203_v18  ;;  %v1211_v3 = vsel %vm384_vm4, %v1203_v18, %v2834_v16 }
 0x568   :  { %v1226_v63 = vmul.f32 %v1218_v27, %v1211_v3  ;;  %v1227_v18 = vmul.f32 %v1219_v4, %v1207_v20  ;;  %v1410_v27 = vadd.f32 %v1146_v38, %v1106_v25  ;;  %v1411_v4 = vadd.f32 %v1147_v49, %v1107_v59 }
 0x56a   :  { %v1259_v61 = vpop.permute.xlu1 %1258  ;;  %v1291_v37 = vpop.permute.xlu0 %1290 }
 0x56b   :  { %v1263_v23 = vsel %vm443_vm5, %v1251_v58, %v1259_v61  ;;  %v1267_v16 = vsel %vm443_vm5, %v1259_v61, %v1251_v58  ;;  %v1418_v61 = vadd.f32 %v1226_v63, %v1186_v47 }
 0x56c   :  { %v1282_v43 = vmul.f32 %v1274_v22, %v1263_v23  ;;  %v1283_v28 = vmul.f32 %v1275_v24, %v1267_v16 }
 0x56d   :  { %v1442_v11 = vadd.f32 %v1418_v61, %v1410_v27  ;;  %v1773_v27 = vld [vmem:[%s3043_s3 + $0x10] sm:$0xff] }
 0x56e   :  { %v1299_v55 = vpop.permute.xlu1 %1298  ;;  %v1331_v39 = vpop.permute.xlu0 %1330  ;;  %v1426_v48 = vadd.f32 %v1282_v43, %v1242_v36  ;;  %v1427_v29 = vadd.f32 %v1283_v28, %v1243_v53  ;;  %v1395_v36 = vld [vmem:[#allocation2 + $0x238] sm:$0xff] }
 0x56f   :  { %v1303_v58 = vsel %vm485_vm6, %v1291_v37, %v1299_v55  ;;  %v1307_v1 = vsel %vm485_vm6, %v1299_v55, %v1291_v37  ;;  %v1419_v37 = vadd.f32 %v1227_v18, %v1187_v60 }
 0x570   :  { %v1322_v14 = vmul.f32 %v1314_v32, %v1303_v58  ;;  %v1323_v0 = vmul.f32 %v1315_v12, %v1307_v1 }
 0x571   :  { %v1443_v51 = vadd.f32 %v1419_v37, %v1411_v4 }
 0x572   :  { %v1339_v57 = vpop.permute.xlu1 %1338  ;;  %v1369_v2 = vpop.permute.xlu0 %1368 }
 0x573   :  { %v1343_v6 = vsel %vm527_vm7, %v1331_v39, %v1339_v57  ;;  %v1347_v50 = vsel %vm527_vm7, %v1339_v57, %v1331_v39 }
 0x574   :  { %v1362_v31 = vmul.f32 %v1354_v40, %v1343_v6  ;;  %v1363_v46 = vmul.f32 %v1355_v26, %v1347_v50 }
 0x576   :  { %v1434_v44 = vadd.f32 %v1362_v31, %v1322_v14  ;;  %v1435_v30 = vadd.f32 %v1363_v46, %v1323_v0  ;;  %v1377_v45 = vpop.permute.xlu1 %1376  ;;  %v1371_v62 = vpop.permute.xlu0 %1370 }
 0x577   :  { %v1382_v20 = vsel %vm569_vm8, %v1369_v2, %v1377_v45  ;;  %v1386_v3 = vsel %vm569_vm8, %v1377_v45, %v1369_v2 }
 0x578   :  { %v1450_v55 = vadd.f32 %v1434_v44, %v1426_v48  ;;  %v1451_v39 = vadd.f32 %v1435_v30, %v1427_v29  ;;  %v1400_v19 = vmul.f32 %v1392_v5, %v1382_v20  ;;  %v1401_v10 = vmul.f32 %v1393_v56, %v1386_v3  ;;  %v1772_v29 = vld [vmem:[%s3043_s3] sm:$0xff] }
 0x57a   :  { %v1464_v53 = vadd.f32 %v1456_v34, %v1400_v19  ;;  %v1465_v33 = vadd.f32 %v1457_v42, %v1401_v10  ;;  %v1379_v22 = vpop.permute.xlu1 %1378  ;;  %v1458_v16 = vadd.f32 %v1450_v55, %v1442_v11  ;;  %v1459_v25 = vadd.f32 %v1451_v39, %v1443_v51  ;;  %v1771_v34 = vld [vmem:[%s3043_s3 + $0x8] sm:$0xff]  ;;  %v1774_v10 = vld [vmem:[%s3043_s3 + $0x18] sm:$0xff] }
 0x57b   :  { %v1383_v24 = vsel %vm569_vm8, %v1371_v62, %v1379_v22  ;;  %v1387_v23 = vsel %vm569_vm8, %v1379_v22, %v1371_v62 }
 0x57c   :  { %v1472_v59 = vadd.f32 %v1464_v53, %v2396_v54  ;;  %v1473_v35 = vadd.f32 %v1465_v33, %v2396_v54  ;;  %v1402_v9 = vmul.f32 %v1394_v7, %v1383_v24  ;;  %v1403_v15 = vmul.f32 %v1395_v36, %v1387_v23 }
 0x57e   :  { %v1480_v8 = vmul.f32 0.16666667, %v1472_v59  ;;  %v1481_v32 = vmul.f32 0.16666667, %v1473_v35  ;;  %v1466_v63 = vadd.f32 %v1458_v16, %v1402_v9  ;;  %v1467_v18 = vadd.f32 %v1459_v25, %v1403_v15  ;;  %v1775_v16 = vld [vmem:[%s3046_s6] sm:$0x1] }
 0x57f   :  { %v1776_v15 = vld [vmem:[%s3043_s3 + $0x38] sm:$0xff] }
 0x580   :  { %v1474_v12 = vadd.f32 %v1466_v63, %v2404_v17  ;;  %v1475_v58 = vadd.f32 %v1467_v18, %v2404_v17  ;;  %v1488_v1 = vadd.f32 0.5, %v1480_v8  ;;  %v1489_v40 = vadd.f32 0.5, %v1481_v32  ;;  %v1777_v32 = vld [vmem:[%s3043_s3 + $0x30] sm:$0xff] }
 0x582   :  { %v1482_v41 = vmul.f32 0.16666667, %v1474_v12  ;;  %v1483_v26 = vmul.f32 0.16666667, %v1475_v58  ;;  %v1496_v38 = vmax.f32 %v1488_v1, 0.0  ;;  %v1497_v49 = vmax.f32 %v1489_v40, 0.0 }
 0x583   :  { %v1779_v1 = vld [vmem:[%s3043_s3 + $0x20] sm:$0xff] }
 0x584   :  { %v1504_v43 = vmin.f32 %v1496_v38, 1.0  ;;  %v1505_v28 = vmin.f32 %v1497_v49, 1.0  ;;  %v1490_v57 = vadd.f32 0.5, %v1482_v41  ;;  %v1491_v54 = vadd.f32 0.5, %v1483_v26 }
 0x586   :  { %v2922_v47 = vmul.f32 %v1504_v43, %v1472_v59  ;;  %v2924_v60 = vmul.f32 %v1505_v28, %v1473_v35  ;;  %v1498_v6 = vmax.f32 %v1490_v57, 0.0  ;;  %v1499_v50 = vmax.f32 %v1491_v54, 0.0  ;;  %v1780_v43 = vld [vmem:[%s3045_s5 + $0x78] sm:$0xff]  ;;  %v1781_v57 = vld [vmem:[%s3045_s5 + $0x70] sm:$0xff] }
 0x587   :  { %v3090_v35 = vsub.s32 0, %v2437_v21 }
 0x588   :  { %v1522_v14 = vadd.f32 %v2924_v60, %v2922_v47  ;;  %v1506_v17 = vmin.f32 %v1498_v6, 1.0  ;;  %v1507_v0 = vmin.f32 %v1499_v50, 1.0 }
 0x58a   :  { %1523 = vadd.xlane.f32.xlu0 %v1522_v14  ;;  %v2928_v31 = vmul.f32 %v1506_v17, %v1474_v12  ;;  %v2930_v46 = vmul.f32 %v1507_v0, %v1475_v58  ;;  %v1778_v58 = vld [vmem:[%s3043_s3 + $0x28] sm:$0xff] }
 0x58c   :  { %v1525_v2 = vadd.f32 %v2930_v46, %v2928_v31 }
 0x58e   :  { %1526 = vadd.xlane.f32.xlu0 %v1525_v2 }
 0x5d5   :  { %v1518_v37 = vpop.xlane.xlu0 %1517 }
 0x5d6   :  { %v1528_v56 = vmul.f32 0.00390625, %v1518_v37 }
 0x5d8   :  { %v1532_v44 = vmul.f32 %v1772_v29, %v1528_v56 }
 0x5d9   :  { %v1521_v61 = vpop.xlane.xlu1 %1520 }
 0x5da   :  { %v1529_v5 = vmul.f32 0.00390625, %v1521_v61  ;;  %v1536_v3 = vsel %vm748_vm9, %v1532_v44, 0.0  ;;  %v1782_v61 = vld [vmem:[%s3045_s5 + $0x68] sm:$0xff] }
 0x5dc   :  { %v1533_v42 = vmul.f32 %v1771_v34, %v1529_v5  ;;  %v1783_v5 = vld [vmem:[%s3045_s5 + $0x60] sm:$0xff] }
 0x5de   :  { %v1537_v45 = vsel %vm748_vm9, %v1533_v42, 0.0 }
 0x5df   :  { %v1538_v19 = vadd.f32 %v1537_v45, %v1536_v3 }
 0x613   :  { %v1524_v48 = vpop.xlane.xlu0 %1523 }
 0x614   :  { %v1530_v30 = vmul.f32 0.00390625, %v1524_v48 }
 0x616   :  { %v1534_v4 = vmul.f32 %v1773_v27, %v1530_v30 }
 0x617   :  { %v1527_v20 = vpop.xlane.xlu0 %1526 }
 0x618   :  { %v1539_v55 = vsel %vm748_vm9, %v1534_v4, 0.0  ;;  %v1531_v39 = vmul.f32 0.00390625, %v1527_v20  ;;  %v1726_v20 = vld [vmem:[%s3045_s5 + $0x40] sm:$0xff] }
 0x619   :  { %v1540_v51 = vadd.f32 %v1539_v55, %v1538_v19  ;;  %v1727_v19 = vld [vmem:[%s3045_s5 + $0x48] sm:$0xff] }
 0x61a   :  { %v1535_v11 = vmul.f32 %v1774_v10, %v1531_v39 }
 0x61c   :  { %v1541_v7 = vsel %vm748_vm9, %v1535_v11, 0.0 }
 0x61d   :  { %v1542_v36 = vadd.f32 %v1541_v7, %v1540_v51 }
 0x61f   :  { %v1543_v53 = vrot.slane %v1542_v36, 4 }
 0x621   :  { %v1544_v33 = vadd.f32 %v1543_v53, %v1542_v36 }
 0x623   :  { %v1545_v62 = vrot.slane %v1544_v33, 2 }
 0x625   :  { %v1546_v22 = vadd.f32 %v1545_v62, %v1544_v33 }
 0x627   :  { %v1547_v24 = vrot.slane %v1546_v22, 1 }
 0x629   :  { %v1548_v23 = vadd.f32 %v1547_v24, %v1546_v22 }
 0x62b   :  { %v1549_v25 = vadd.f32 %v1775_v16, %v1548_v23  ;;  %v3091_v23 = vld [vmem:[#allocation14_spill] sm:$0xff] }
 0x62d   :  { %v1550_v59 = vmax.f32 %v1549_v25, 0.0  ;;  %v3092_v25 = vld [vmem:[#allocation15_spill] sm:$0xff] }
 0x62f   :  { %v1554_v9 = vrot.slane %v1550_v59, %v3090_v35 }
 0x631   :  { %v1558_v8 = vmul.f32 %v1776_v15, %v1554_v9  ;;  %v1557_v63 = vmul.f32 %v1777_v32, %v1554_v9  ;;  %v1556_v21 = vmul.f32 %v1778_v58, %v1554_v9  ;;  %v1555_v40 = vmul.f32 %v1779_v1, %v1554_v9  ;;  %v3094_v9 = vld [vmem:[#allocation9_spill] sm:$0xff]  ;;  %v3095_v32 = vld [vmem:[#allocation16_spill] sm:$0xff]  ;;  %v1787_v1 = vld [vmem:[%s3040_s0 + $0x10] sm:$0xff] }
 0x632   :  { %v1786_v58 = vld [vmem:[%s3044_s4] sm:$0xff] }
 0x633   :  { %v1568_v18 = vsel %vm748_vm9, %v1558_v8, 0.0  ;;  %v1565_v12 = vsel %vm748_vm9, %v1557_v63, 0.0  ;;  %v1562_v41 = vsel %vm748_vm9, %v1556_v21, 0.0  ;;  %v1559_v26 = vsel %vm748_vm9, %v1555_v40, 0.0 }
 0x634   :  { %1569 = vadd.xlane.f32.xlu1 %v1568_v18  ;;  %1566 = vadd.xlane.f32.xlu0 %v1565_v12  ;;  %v3096_v18 = vld [vmem:[#allocation17_spill] sm:$0xff]  ;;  %v3097_v21 = vmov 0.0  }
 0x638   :  { %1563 = vadd.xlane.f32.xlu1 %v1562_v41  ;;  %1560 = vadd.xlane.f32.xlu0 %v1559_v26  ;;  %v1788_v41 = vld [vmem:[%s3040_s0 + $0x18] sm:$0xff] }
 0x6bd   :  { %v1570_v38 = vpop.xlane.xlu1 %1569  ;;  %v1567_v49 = vpop.xlane.xlu0 %1566 }
 0x6be   :  { %v1574_v28 = vadd.f32 %v1780_v43, %v1570_v38  ;;  %v1573_v54 = vadd.f32 %v1781_v57, %v1567_v49  ;;  %v1789_v38 = vld [vmem:[%s3044_s4 + $0x8] sm:$0xff]  ;;  %v1790_v57 = vld [vmem:[%s3040_s0 + $0x20] sm:$0xff]  ;;  %s1850_s4 = smov [#allocation5]  }
 0x6bf   :  { %s1710_s21 = sshll.u32 %s1850_s4, 4  ;;  %s1711_s21 = int_to_ptr.vmem [resolvable:$true] %s1710_s21 }
 0x6c0   :  { %v1578_v6 = vmul.f32 0.16666667, %v1574_v28  ;;  %v1577_v50 = vmul.f32 0.16666667, %v1573_v54  ;;  %s1814_s1 = scalar_lea.vmem %s1711_s21, 1024  ;;  %p1819_p6 = scmp.lt.s32.totalorder %s1711_s21, %s1711_s21 }
 0x6c1   :  { %v1564_v14 = vpop.xlane.xlu1 %1563  ;;  %v1561_v17 = vpop.xlane.xlu0 %1560  ;;  %p1815_p5 = scmp.ne.s32.totalorder %s1711_s21, %s1814_s1  ;;  %p1820_p7 = scmp.lt.s32.totalorder %s1814_s1, %s1814_s1 }
 0x6c2   :  { %v1582_v0 = vadd.f32 0.5, %v1578_v6  ;;  %v1581_v2 = vadd.f32 0.5, %v1577_v50  ;;  %v1572_v37 = vadd.f32 %v1782_v61, %v1564_v14  ;;  %v1571_v56 = vadd.f32 %v1783_v5, %v1561_v17  ;;  %v1791_v14 = vld [vmem:[%s3040_s0 + $0x28] sm:$0xff]  ;;  %v1792_v61 = vld [vmem:[%s3040_s0 + $0x30] sm:$0xff] }
 0x6c3   :  { %p1821_p8 = por %p1820_p7, %p1819_p6 }
 0x6c4   :  { %v1586_v34 = vmax.f32 %v1582_v0, 0.0  ;;  %v1585_v42 = vmax.f32 %v1581_v2, 0.0  ;;  %v1576_v48 = vmul.f32 0.16666667, %v1572_v37  ;;  %v1575_v29 = vmul.f32 0.16666667, %v1571_v56 }
 0x6c5   :  { %v1793_v56 = vld [vmem:[%s3040_s0 + $0x38] sm:$0xff]  ;;  %p1822_p9 = pnand %p1821_p8, %p1815_p5 }
 0x6c6   :  { %v1590_v44 = vmin.f32 %v1586_v34, 1.0  ;;  %v1589_v30 = vmin.f32 %v1585_v42, 1.0  ;;  %v1580_v45 = vadd.f32 0.5, %v1576_v48  ;;  %v1579_v27 = vadd.f32 0.5, %v1575_v29 }
 0x6c8   :  { %v1584_v4 = vmax.f32 %v1580_v45, 0.0  ;;  %1608 = vperm.xlu1 %1766, %v1590_v44   ;;  %1603 = vperm.xlu0 %1765, %v1589_v30   ;;  %v1583_v55 = vmax.f32 %v1579_v27, 0.0 }
 0x6ca   :  { %v1588_v3 = vmin.f32 %v1584_v4, 1.0  ;;  %v1587_v39 = vmin.f32 %v1583_v55, 1.0 }
 0x6cc   :  { %1598 = vperm.xlu1 %1766, %v1588_v3   ;;  %834 = vperm.xlu0 %1765, %v1726_v20  }
 0x6d0   :  { %1593 = vperm.xlu1 %1766, %v1587_v39  }
 0x6d4   :  { %839 = vperm.xlu1 %1766, %v1727_v19  }
 0x743   :  { %v1609_v10 = vpop.permute.xlu1 %1608  ;;  %v1604_v11 = vpop.permute.xlu0 %1603 }
 0x744   :  { %v1617_v51 = vmul.f32 %v1609_v10, %v2928_v31  ;;  %v1618_v7 = vmul.f32 %v1609_v10, %v2930_v46  ;;  %v1616_v36 = vmul.f32 %v1604_v11, %v2924_v60  ;;  %v1615_v53 = vmul.f32 %v1604_v11, %v2922_v47  ;;  %v1784_v60 = vld [vmem:[%s3040_s0] sm:$0xff]  ;;  %v1785_v47 = vld [vmem:[%s3040_s0 + $0x8] sm:$0xff] }
 0x746   :  { %1643 = vmatprep.subr.mxu0 %v1618_v7 }
 0x747   :  { %1644 = vmatpush1.msra.mxu0 %v1617_v51  ;;  %v1599_v33 = vpop.permute.xlu1 %1598  ;;  %v835_v62 = vpop.permute.xlu0 %834 }
 0x748   :  { %v1613_v22 = vmul.f32 %v1599_v33, %v2812_v13  ;;  %v1614_v24 = vmul.f32 %v1599_v33, %v2814_v52  ;;  %v916_v16 = vadd.f32 %v3091_v23, %v835_v62  ;;  %v918_v59 = vadd.f32 %v3092_v25, %v835_v62  ;;  %1645 = vmatprep.subr.mxu0 %v1616_v36  ;;  %v3093_v52 = vld [vmem:[#allocation8_spill] sm:$0xff] }
 0x749   :  { %1646 = vmatpush1.msra.mxu0 %v1615_v53 }
 0x74a   :  { %v926_v31 = vadd.f32 %v1784_v60, %v916_v16  ;;  %v927_v46 = vadd.f32 %v1785_v47, %v918_v59  ;;  %1647 = vmatprep.subr.mxu0 %v1614_v24 }
 0x74b   :  { %v1594_v13 = vpop.permute.xlu1 %1593  ;;  %1648 = vmatpush1.msra.mxu0 %v1613_v22 }
 0x74c   :  { %930 = vst [vmem:[#allocation5] sm:$0xff] %v926_v31  ;;  %931 = vst [vmem:[#allocation5 + $0x8] sm:$0xff] %v927_v46  ;;  %v1611_v35 = vmul.f32 %v1594_v13, %v3093_v52  ;;  %v1612_v15 = vmul.f32 %v1594_v13, %v3094_v9 }
 0x74e   :  { %1649 = vmatprep.subr.mxu0 %v1612_v15 }
 0x74f   :  { %v840_v8 = vpop.permute.xlu1 %839  ;;  %1650 = vmatpush1.msra.mxu0 %v1611_v35 }
 0x750   :  { %v922_v63 = vadd.f32 %v3095_v32, %v840_v8  ;;  %v924_v12 = vadd.f32 %v3096_v18, %v840_v8  ;;  %1750 = vmatmul.mubr.msk.f32.vlgmr.msra.gmra.mxu0 %vm842_vm10, %v1786_v58 }
 0x751   :  { %1689 = vmatprep.mubr.f32.mxu0 %v3097_v21 }
 0x752   :  { %v928_v40 = vadd.f32 %v1787_v1, %v922_v63  ;;  %v929_v26 = vadd.f32 %v1788_v41, %v924_v12 }
 0x754   :  { %932 = vst [vmem:[#allocation5 + $0x10] sm:$0xff] %v928_v40  ;;  %933 = vst [vmem:[#allocation5 + $0x18] sm:$0xff] %v929_v26  ;;  %1751 = vmatmul.mubr.msk.f32.gmra.mxu0 %vm842_vm10, %v1789_v38 }
 0x810   :  { %v1685_v49 = vpop.f32.mrf.mxu0 }
 0x811   :  { %v1686_v43 = vadd.f32 %v1685_v49, %v835_v62 }
 0x812   :  { %v1687_v28 = vpop.f32.mrf.mxu0 }
 0x813   :  { %v1696_v54 = vadd.f32 %v1790_v57, %v1686_v43  ;;  %v1688_v6 = vadd.f32 %v1687_v28, %v835_v62 }
 0x814   :  { %v1691_v50 = vpop.f32.mrf.mxu0 }
 0x815   :  { %1701 = vst [vmem:[#allocation5 + $0x20] sm:$0xff] %v1696_v54  ;;  %v1697_v17 = vadd.f32 %v1791_v14, %v1688_v6  ;;  %v1692_v0 = vadd.f32 %v1691_v50, %v840_v8 }
 0x816   :  { %v1693_v2 = vpop.f32.mrf.mxu0 }
 0x817   :  { %1702 = vst [vmem:[#allocation5 + $0x28] sm:$0xff] %v1697_v17  ;;  %v1698_v37 = vadd.f32 %v1792_v61, %v1692_v0  ;;  %v1694_v5 = vadd.f32 %v1693_v2, %v840_v8 }
 0x819   :  { %1703 = vst [vmem:[#allocation5 + $0x30] sm:$0xff] %v1698_v37  ;;  %v1699_v34 = vadd.f32 %v1793_v56, %v1694_v5 }
 0x81b   :  { %1704 = vst [vmem:[#allocation5 + $0x38] sm:$0xff] %v1699_v34 }
 0x81c   :  { %1825 = shalt.err (!%p1822_p9)
}
 0x81d   :  { %1716 = dma.vmem_to_hbm [thread:$0]  %s1711_s21, 1024, %s3047_s7, [#allocation4], %s1839_s27, %s1839_s27, %s1840_s28  }
 0x81e   :  { %1836 = dma.done.wait [#allocation4], 1024  }
 0x81f   :  { %1837 = vsyncadd [#allocation4], 4294966272 }
 0x820   :  { %1720 = vsyncpa [#allocation3], 1 }
 0x821   :  { %1721 = vsyncpa [#allocation4], 1 }

</bundles_post_ra>
